<compile_context>
chip_gen: v7x
topology: tpu7x:2x2x1
jax: 0.10.0
libtpu: 0.0.40
codegen_flags: <defaults>
</compile_context>

<pallas_src>
import jax
import jax.numpy as jnp
from jax.experimental import pallas as pl
from jax.experimental.pallas import tpu as pltpu


def baseline_kernel(len_ref, emb_ref, wih_ref, whh_ref, bias_ref,
                    wfc_ref, bfc_ref, out_ref, seq_sc):
    """Stacked tanh RNN + masked last-hidden select + FC for one batch block.

    All batch rows are lane-packed: G consecutive rows share one sublane row,
    occupying G*H = 128 lanes; weights are block-diagonal accordingly.

    len_ref : VMEM i32 [BBp, GH]     clamped lengths, broadcast over H lanes
    emb_ref : VMEM f32 [T, BBp, GH]  time-major, lane-packed embeddings (E==H)
    wih_ref : VMEM  *  [L, GH, GH]   block-diag W_ih, [in, out] layout
    whh_ref : VMEM  *  [L, GH, GH]   block-diag W_hh, [in, out] layout
    bias_ref: VMEM f32 [L, 1, GH]    b_ih + b_hh, tiled over the G groups
    wfc_ref : VMEM  *  [GH, GO]      block-diag fc weight, O padded to 128
    bfc_ref : VMEM f32 [1, GO]
    out_ref : VMEM f32 [BBp, GO]
    seq_sc  : VMEM f32 [T*BBp, GH]   single reused activation buffer
    (* = matmul dtype: f32 or bf16; accumulation is always f32)
    """
    T, BBp, GH = emb_ref.shape
    L = wih_ref.shape[0]
    TBB = T * BBp
    cdt = wih_ref.dtype                                   # matmul operand dtype

    len_v = len_ref[...]                                  # [BBp, GH] int32
    last = jnp.zeros((BBp, GH), jnp.float32)

    for l in range(L):                                    # L tiny -> static unroll
        # Hoisted input projection for the whole block, written IN PLACE over
        # the previous layer's activations it just consumed (single buffer:
        # halves activation VMEM vs. keeping a separate xw temporary).
        if l == 0:
            x_flat = emb_ref[...].reshape(TBB, GH)        # layer-0 input = embeddings
        else:
            x_flat = seq_sc[...]
        seq_sc[...] = (jnp.dot(x_flat.astype(cdt), wih_ref[l],
                               preferred_element_type=jnp.float32)
                       + bias_ref[l])

        w_hh = whh_ref[l]                                 # [GH, GH]
        h = jnp.zeros((BBp, GH), jnp.float32)             # forward zero-inits h0
        is_last_layer = (l == L - 1)
        # TODO(synk): switch to lax.fori_loop(..., unroll=4..8) with an
        # (h, last) carry once T grows beyond ~16 (bounds live ranges).
        # TODO(synk): for large T and L >= 2, a wavefront (diagonal) schedule
        # across layers would overlap the serial MXU->VPU->EUP latencies.
        for t in range(T):                                # static unroll (T small)
            xw_t = seq_sc[pl.ds(t * BBp, BBp), :]
            h = jnp.tanh(xw_t + jnp.dot(h.astype(cdt), w_hh,
                                        preferred_element_type=jnp.float32))
            if is_last_layer:
                # Masked running select == rnn_out[arange(B), lengths - 1].
                last = jnp.where(len_v == (t + 1), h, last)
            else:
                seq_sc[pl.ds(t * BBp, BBp), :] = h        # next layer's input

    # logits = last_hidden @ W_fc^T + b_fc  (lane-dense, unmasked store)
    out_ref[...] = (jnp.dot(last.astype(cdt), wfc_ref[...],
                            preferred_element_type=jnp.float32)
                    + bfc_ref[...])


def _pack_factor(hidden):
    """How many batch rows to pack along the lane axis (G*H <= 128)."""
    if hidden < 128 and 128 % hidden == 0:
        return 128 // hidden
    return 1


def _block_diag(w, g):
    """Expand weights to a block-diagonal matrix with g copies on the diagonal."""
    eye = jnp.eye(g, dtype=w.dtype)
    if w.ndim == 3:                                       # [L, H_in, H_out]
        bd = jnp.einsum('ab,lij->laibj', eye, w)
        L, _, hi, _, ho = bd.shape
        return bd.reshape(L, g * hi, g * ho)
    bd = jnp.einsum('ab,ij->aibj', eye, w)                # [H_in, H_out]
    _, hi, _, ho = bd.shape
    return bd.reshape(g * hi, g * ho)


def baseline_forward(tokens, lengths, params, *, block_b=None,
                     matmul_dtype=jnp.float32):
    """Wrapper: embedding gather + layout prep in JAX, hot path in Pallas."""
    emb_table = params["emb"]                             # [V, E]
    B, T = tokens.shape
    L, H, _ = params["whh"].shape
    E = emb_table.shape[1]
    O = params["wfc"].shape[0]
    assert E == H, "module's forward requires embed_dim == hidden_size"

    G = _pack_factor(H)                                   # lane-packed batch groups
    GH = G * H
    unit = 8 * G                                          # batch rows per aligned block-row unit
    if block_b is None:
        # Amortize fixed per-step latency over >= 64 batch rows when available;
        # keep blocks a multiple of 8*G.  (On v7x, pick block_b so the grid
        # size is even and both TensorCores get work.)
        target = max(unit, ((64 + unit - 1) // unit) * unit)
        block_b = min(target, ((B + unit - 1) // unit) * unit)
    assert block_b % unit == 0, "block_b must be a multiple of 8 * pack_factor"
    BB = block_b
    BBp = BB // G
    B_pad = ((B + BB - 1) // BB) * BB
    nb = B_pad // BB
    O_pad = ((O + 127) // 128) * 128
    GO = G * O_pad

    # Gather embeddings directly in time-major order (no separate transpose
    # pass), pad the batch, then lane-pack G consecutive rows (pure reshape).
    emb_tm = emb_table[tokens.swapaxes(0, 1)].astype(jnp.float32)   # [T, B, H]
    emb_tm = jnp.pad(emb_tm, ((0, 0), (0, B_pad - B), (0, 0)))
    emb_pk = emb_tm.reshape(T, B_pad // G, GH)

    # Clamp lengths to [1, T] (guards len==0; reference would read index -1),
    # pad, broadcast over the H lanes of each packed group.
    len_c = jnp.clip(lengths.astype(jnp.int32), 1, T)
    len_c = jnp.pad(len_c, (0, B_pad - B), constant_values=1)
    len_pk = jnp.broadcast_to(len_c.reshape(B_pad // G, G, 1),
                              (B_pad // G, G, H)).reshape(B_pad // G, GH)

    # Weights: [in, out] layout, block-diagonal lane packing, optional bf16
    # matmul operands (f32 accumulation stays in the kernel dots).
    wih_bd = _block_diag(jnp.transpose(params["wih"], (0, 2, 1)), G).astype(matmul_dtype)
    whh_bd = _block_diag(jnp.transpose(params["whh"], (0, 2, 1)), G).astype(matmul_dtype)
    bias = jnp.tile(params["bih"] + params["bhh"], (1, G)).reshape(L, 1, GH)
    bias = bias.astype(jnp.float32)
    wfc_pad = jnp.pad(params["wfc"].T, ((0, 0), (0, O_pad - O)))    # [H, O_pad]
    wfc_bd = _block_diag(wfc_pad, G).astype(matmul_dtype)           # [GH, GO]
    bfc = jnp.tile(jnp.pad(params["bfc"], (0, O_pad - O)), (G,)).reshape(1, GO)
    bfc = bfc.astype(jnp.float32)

    # Explicit VMEM budget (v7x has only 64 MiB physical; keep the limit sane).
    wb = 2 if matmul_dtype == jnp.bfloat16 else 4
    vmem_est = (T * BBp * GH * 4                  # seq_sc scratch
                + 2 * T * BBp * GH * 4            # emb block (double-buffered)
                + T * BBp * GH * 4                # live projection temporary
                + 2 * (2 * L * GH * GH + GH * GO) * wb
                + 2 * (L * GH + GO) * 4
                + 2 * BBp * (GH + GO) * 4)
    vmem_limit = int(min(64 * 1024 * 1024, max(32 * 1024 * 1024, 1.5 * vmem_est)))

    # TODO(synk): give the constant-index weight specs pipeline_mode=pl.Buffered(1)
    # once H/L grow enough that their default 2x buffering matters for VMEM.
    out = pl.pallas_call(
        baseline_kernel,
        out_shape=jax.ShapeDtypeStruct((B_pad // G, GO), jnp.float32),
        grid=(nb,),
        in_specs=[
            pl.BlockSpec((BBp, GH), lambda i: (i, 0)),         # lengths (packed)
            pl.BlockSpec((T, BBp, GH), lambda i: (0, i, 0)),   # embeddings (time-major, packed)
            pl.BlockSpec((L, GH, GH), lambda i: (0, 0, 0)),    # W_ih (block-diag)
            pl.BlockSpec((L, GH, GH), lambda i: (0, 0, 0)),    # W_hh (block-diag)
            pl.BlockSpec((L, 1, GH), lambda i: (0, 0, 0)),     # b_ih + b_hh
            pl.BlockSpec((GH, GO), lambda i: (0, 0)),          # W_fc (block-diag)
            pl.BlockSpec((1, GO), lambda i: (0, 0)),           # b_fc
        ],
        out_specs=pl.BlockSpec((BBp, GO), lambda i: (i, 0)),
        scratch_shapes=[pltpu.VMEM((T * BBp, GH), jnp.float32)],
        compiler_params=pltpu.CompilerParams(
            dimension_semantics=("parallel",),
            vmem_limit_bytes=vmem_limit),
    )(len_pk, emb_pk, wih_bd, whh_bd, bias, wfc_bd, bfc)

    # Un-pack lanes back into batch rows and slice off padding.
    out = out.reshape(B_pad // G, G, O_pad).reshape(B_pad, O_pad)
    return out[:B, :O]


def baseline_reference(tokens, lengths, params):
    """Pure-JAX reference mirroring the PyTorch forward."""
    emb = params["emb"][tokens].astype(jnp.float32)       # [B, T, E]
    B, T, _ = emb.shape
    L = params["whh"].shape[0]
    layer_in = emb
    for l in range(L):
        h = jnp.zeros((B, params["whh"].shape[1]), jnp.float32)
        outs = []
        for t in range(T):
            h = jnp.tanh(layer_in[:, t, :] @ params["wih"][l].T + params["bih"][l]
                         + h @ params["whh"][l].T + params["bhh"][l])
            outs.append(h)
        layer_in = jnp.stack(outs, axis=1)
    last = layer_in[jnp.arange(B), lengths - 1]
    return last @ params["wfc"].T + params["bfc"]


def init_params(key, vocab_size, embed_dim, hidden_size, output_size, num_layers):
    assert embed_dim == hidden_size, "module's forward requires embed_dim == hidden_size"
    keys = jax.random.split(key, 4 + 4 * num_layers)
    k = iter(keys)
    scale = 1.0 / jnp.sqrt(hidden_size)
    params = {
        "emb": jax.random.normal(next(k), (vocab_size, embed_dim), jnp.float32),
        "wih": jnp.stack([jax.random.uniform(next(k), (hidden_size, embed_dim),
                                             jnp.float32, -scale, scale)
                          for _ in range(num_layers)]),
        "whh": jnp.stack([jax.random.uniform(next(k), (hidden_size, hidden_size),
                                             jnp.float32, -scale, scale)
                          for _ in range(num_layers)]),
        "bih": jnp.stack([jax.random.uniform(next(k), (hidden_size,),
                                             jnp.float32, -scale, scale)
                          for _ in range(num_layers)]),
        "bhh": jnp.stack([jax.random.uniform(next(k), (hidden_size,),
                                             jnp.float32, -scale, scale)
                          for _ in range(num_layers)]),
        "wfc": jax.random.uniform(next(k), (output_size, hidden_size),
                                  jnp.float32, -scale, scale),
        "bfc": jax.random.uniform(next(k), (output_size,),
                                  jnp.float32, -scale, scale),
    }
    return params


if __name__ == "__main__":
    # Small, module-consistent shapes.
    B, T = 2, 8
    vocab_size = 512
    embed_dim = hidden_size = 32   # forward's zero h0 uses embed_dim -> must equal hidden_size
    output_size = 16
    num_layers = 3

    key = jax.random.PRNGKey(0)
    k_param, k_tok = jax.random.split(key)
    params = init_params(k_param, vocab_size, embed_dim, hidden_size,
                         output_size, num_layers)

    tokens = jax.random.randint(k_tok, (B, T), 0, vocab_size, dtype=jnp.int32)
    lengths = jnp.array([5, 8], dtype=jnp.int32)   # last valid timestep per batch row

    ref = baseline_reference(tokens, lengths, params)

    # f32 matmul operands: numerically closest to the PyTorch reference.
    logits = baseline_forward(tokens, lengths, params, matmul_dtype=jnp.float32)
    logits = jax.block_until_ready(logits)
    assert logits.shape == (B, output_size)
    assert jnp.allclose(logits, ref, atol=1e-4, rtol=1e-4), (
        f"f32 path: max abs diff {jnp.max(jnp.abs(logits - ref))}")

    # bf16 matmul operands (f32 accumulation): the fast path on v5e/v6e/v7x.
    # Looser tolerance — this is a deliberate numerics/perf trade-off.
    logits_bf16 = baseline_forward(tokens, lengths, params,
                                   matmul_dtype=jnp.bfloat16)
    logits_bf16 = jax.block_until_ready(logits_bf16)
    assert logits_bf16.shape == (B, output_size)
    assert jnp.allclose(logits_bf16, ref, atol=5e-2, rtol=5e-2), (
        f"bf16 path: max abs diff {jnp.max(jnp.abs(logits_bf16 - ref))}")

    print("KERNEL_OK")
</pallas_src>

<mosaic_0001>
module attributes {stable_mosaic.version = 11 : i64} {
  func.func @baseline_kernel(%arg0: i32, %arg1: memref<8x128xi32, #tpu.memory_space<vmem>>, %arg2: memref<8x8x128xf32, #tpu.memory_space<vmem>>, %arg3: memref<3x128x128xf32, #tpu.memory_space<vmem>>, %arg4: memref<3x128x128xf32, #tpu.memory_space<vmem>>, %arg5: memref<3x1x128xf32, #tpu.memory_space<vmem>>, %arg6: memref<128x512xf32, #tpu.memory_space<vmem>>, %arg7: memref<1x512xf32, #tpu.memory_space<vmem>>, %arg8: memref<8x512xf32, #tpu.memory_space<vmem>>, %arg9: memref<64x128xf32, #tpu.memory_space<vmem>>) attributes {dimension_semantics = [#tpu.dimension_semantics<parallel>], iteration_bounds = array<i64: 1>, scalar_prefetch = 0 : i64, scratch_operands = 1 : i64, tpu.core_type = #tpu.core_type<tc>, window_params = [{transform_indices = @transform_0, window_bounds = array<i64: 8, 128>}, {transform_indices = @transform_1, window_bounds = array<i64: 8, 8, 128>}, {pipeline_mode = #tpu.pipeline_mode<synchronous>, transform_indices = @transform_2, window_bounds = array<i64: 3, 128, 128>}, {pipeline_mode = #tpu.pipeline_mode<synchronous>, transform_indices = @transform_3, window_bounds = array<i64: 3, 128, 128>}, {pipeline_mode = #tpu.pipeline_mode<synchronous>, transform_indices = @transform_4, window_bounds = array<i64: 3, 1, 128>}, {pipeline_mode = #tpu.pipeline_mode<synchronous>, transform_indices = @transform_5, window_bounds = array<i64: 128, 512>}, {pipeline_mode = #tpu.pipeline_mode<synchronous>, transform_indices = @transform_6, window_bounds = array<i64: 1, 512>}, {transform_indices = @transform_7, window_bounds = array<i64: 8, 512>}]} {
    %c0 = arith.constant 0 : index
    %c0_0 = arith.constant 0 : index
    %0 = vector.load %arg1[%c0, %c0_0] : memref<8x128xi32, #tpu.memory_space<vmem>>, vector<8x128xi32>
    %cst = arith.constant 0.000000e+00 : f32
    %1 = vector.broadcast %cst : f32 to vector<8x128xf32>
    %c0_1 = arith.constant 0 : index
    %c0_2 = arith.constant 0 : index
    %c0_3 = arith.constant 0 : index
    %2 = vector.load %arg2[%c0_1, %c0_2, %c0_3] : memref<8x8x128xf32, #tpu.memory_space<vmem>>, vector<8x8x128xf32>
    %3 = vector.shape_cast %2 : vector<8x8x128xf32> to vector<64x128xf32>
    %c0_4 = arith.constant 0 : index
    %c0_5 = arith.constant 0 : index
    %c0_6 = arith.constant 0 : index
    %4 = vector.load %arg3[%c0_4, %c0_5, %c0_6] : memref<3x128x128xf32, #tpu.memory_space<vmem>>, vector<1x128x128xf32>
    %5 = vector.shape_cast %4 : vector<1x128x128xf32> to vector<128x128xf32>
    %cst_7 = arith.constant dense<0.000000e+00> : vector<64x128xf32>
    %6 = tpu.matmul %3, %5, %cst_7 {dimension_numbers = #tpu.dot_dimension_numbers<[1], [0], [0], [1], [0, 0, 1, 1], [], []>} : vector<64x128xf32>, vector<128x128xf32>, vector<64x128xf32> -> vector<64x128xf32>
    %c0_8 = arith.constant 0 : index
    %c0_9 = arith.constant 0 : index
    %c0_10 = arith.constant 0 : index
    %7 = vector.load %arg5[%c0_8, %c0_9, %c0_10] : memref<3x1x128xf32, #tpu.memory_space<vmem>>, vector<1x1x128xf32>
    %8 = vector.shape_cast %7 : vector<1x1x128xf32> to vector<1x128xf32>
    %9 = vector.broadcast %8 : vector<1x128xf32> to vector<64x128xf32>
    %10 = arith.addf %6, %9 : vector<64x128xf32>
    %c0_11 = arith.constant 0 : index
    %c0_12 = arith.constant 0 : index
    %11 = vector.load %arg9[%c0_11, %c0_12] : memref<64x128xf32, #tpu.memory_space<vmem>>, vector<64x128xf32>
    tpu.vector_store %arg9[%c0_11, %c0_12], %10 {strides = array<i32>} : memref<64x128xf32, #tpu.memory_space<vmem>>, vector<64x128xf32>,
    %c0_13 = arith.constant 0 : index
    %c0_14 = arith.constant 0 : index
    %c0_15 = arith.constant 0 : index
    %12 = vector.load %arg4[%c0_13, %c0_14, %c0_15] : memref<3x128x128xf32, #tpu.memory_space<vmem>>, vector<1x128x128xf32>
    %13 = vector.shape_cast %12 : vector<1x128x128xf32> to vector<128x128xf32>
    %cst_16 = arith.constant 0.000000e+00 : f32
    %14 = vector.broadcast %cst_16 : f32 to vector<8x128xf32>
    %c0_17 = arith.constant 0 : index
    %c0_18 = arith.constant 0 : index
    %15 = vector.load %arg9[%c0_17, %c0_18] : memref<64x128xf32, #tpu.memory_space<vmem>>, vector<8x128xf32>
    %cst_19 = arith.constant dense<0.000000e+00> : vector<8x128xf32>
    %16 = tpu.matmul %14, %13, %cst_19 {dimension_numbers = #tpu.dot_dimension_numbers<[1], [0], [0], [1], [0, 0, 1, 1], [], []>} : vector<8x128xf32>, vector<128x128xf32>, vector<8x128xf32> -> vector<8x128xf32>
    %17 = arith.addf %15, %16 : vector<8x128xf32>
    %18 = math.tanh %17 : vector<8x128xf32>
    %c0_20 = arith.constant 0 : index
    %c0_21 = arith.constant 0 : index
    %19 = vector.load %arg9[%c0_20, %c0_21] : memref<64x128xf32, #tpu.memory_space<vmem>>, vector<8x128xf32>
    tpu.vector_store %arg9[%c0_20, %c0_21], %18 {strides = array<i32>} : memref<64x128xf32, #tpu.memory_space<vmem>>, vector<8x128xf32>,
    %c8 = arith.constant 8 : index
    %c0_22 = arith.constant 0 : index
    %20 = vector.load %arg9[%c8, %c0_22] : memref<64x128xf32, #tpu.memory_space<vmem>>, vector<8x128xf32>
    %cst_23 = arith.constant dense<0.000000e+00> : vector<8x128xf32>
    %21 = tpu.matmul %18, %13, %cst_23 {dimension_numbers = #tpu.dot_dimension_numbers<[1], [0], [0], [1], [0, 0, 1, 1], [], []>} : vector<8x128xf32>, vector<128x128xf32>, vector<8x128xf32> -> vector<8x128xf32>
    %22 = arith.addf %20, %21 : vector<8x128xf32>
    %23 = math.tanh %22 : vector<8x128xf32>
    %c8_24 = arith.constant 8 : index
    %c0_25 = arith.constant 0 : index
    %24 = vector.load %arg9[%c8_24, %c0_25] : memref<64x128xf32, #tpu.memory_space<vmem>>, vector<8x128xf32>
    tpu.vector_store %arg9[%c8_24, %c0_25], %23 {strides = array<i32>} : memref<64x128xf32, #tpu.memory_space<vmem>>, vector<8x128xf32>,
    %c16 = arith.constant 16 : index
    %c0_26 = arith.constant 0 : index
    %25 = vector.load %arg9[%c16, %c0_26] : memref<64x128xf32, #tpu.memory_space<vmem>>, vector<8x128xf32>
    %cst_27 = arith.constant dense<0.000000e+00> : vector<8x128xf32>
    %26 = tpu.matmul %23, %13, %cst_27 {dimension_numbers = #tpu.dot_dimension_numbers<[1], [0], [0], [1], [0, 0, 1, 1], [], []>} : vector<8x128xf32>, vector<128x128xf32>, vector<8x128xf32> -> vector<8x128xf32>
    %27 = arith.addf %25, %26 : vector<8x128xf32>
    %28 = math.tanh %27 : vector<8x128xf32>
    %c16_28 = arith.constant 16 : index
    %c0_29 = arith.constant 0 : index
    %29 = vector.load %arg9[%c16_28, %c0_29] : memref<64x128xf32, #tpu.memory_space<vmem>>, vector<8x128xf32>
    tpu.vector_store %arg9[%c16_28, %c0_29], %28 {strides = array<i32>} : memref<64x128xf32, #tpu.memory_space<vmem>>, vector<8x128xf32>,
    %c24 = arith.constant 24 : index
    %c0_30 = arith.constant 0 : index
    %30 = vector.load %arg9[%c24, %c0_30] : memref<64x128xf32, #tpu.memory_space<vmem>>, vector<8x128xf32>
    %cst_31 = arith.constant dense<0.000000e+00> : vector<8x128xf32>
    %31 = tpu.matmul %28, %13, %cst_31 {dimension_numbers = #tpu.dot_dimension_numbers<[1], [0], [0], [1], [0, 0, 1, 1], [], []>} : vector<8x128xf32>, vector<128x128xf32>, vector<8x128xf32> -> vector<8x128xf32>
    %32 = arith.addf %30, %31 : vector<8x128xf32>
    %33 = math.tanh %32 : vector<8x128xf32>
    %c24_32 = arith.constant 24 : index
    %c0_33 = arith.constant 0 : index
    %34 = vector.load %arg9[%c24_32, %c0_33] : memref<64x128xf32, #tpu.memory_space<vmem>>, vector<8x128xf32>
    tpu.vector_store %arg9[%c24_32, %c0_33], %33 {strides = array<i32>} : memref<64x128xf32, #tpu.memory_space<vmem>>, vector<8x128xf32>,
    %c32 = arith.constant 32 : index
    %c0_34 = arith.constant 0 : index
    %35 = vector.load %arg9[%c32, %c0_34] : memref<64x128xf32, #tpu.memory_space<vmem>>, vector<8x128xf32>
    %cst_35 = arith.constant dense<0.000000e+00> : vector<8x128xf32>
    %36 = tpu.matmul %33, %13, %cst_35 {dimension_numbers = #tpu.dot_dimension_numbers<[1], [0], [0], [1], [0, 0, 1, 1], [], []>} : vector<8x128xf32>, vector<128x128xf32>, vector<8x128xf32> -> vector<8x128xf32>
    %37 = arith.addf %35, %36 : vector<8x128xf32>
    %38 = math.tanh %37 : vector<8x128xf32>
    %c32_36 = arith.constant 32 : index
    %c0_37 = arith.constant 0 : index
    %39 = vector.load %arg9[%c32_36, %c0_37] : memref<64x128xf32, #tpu.memory_space<vmem>>, vector<8x128xf32>
    tpu.vector_store %arg9[%c32_36, %c0_37], %38 {strides = array<i32>} : memref<64x128xf32, #tpu.memory_space<vmem>>, vector<8x128xf32>,
    %c40 = arith.constant 40 : index
    %c0_38 = arith.constant 0 : index
    %40 = vector.load %arg9[%c40, %c0_38] : memref<64x128xf32, #tpu.memory_space<vmem>>, vector<8x128xf32>
    %cst_39 = arith.constant dense<0.000000e+00> : vector<8x128xf32>
    %41 = tpu.matmul %38, %13, %cst_39 {dimension_numbers = #tpu.dot_dimension_numbers<[1], [0], [0], [1], [0, 0, 1, 1], [], []>} : vector<8x128xf32>, vector<128x128xf32>, vector<8x128xf32> -> vector<8x128xf32>
    %42 = arith.addf %40, %41 : vector<8x128xf32>
    %43 = math.tanh %42 : vector<8x128xf32>
    %c40_40 = arith.constant 40 : index
    %c0_41 = arith.constant 0 : index
    %44 = vector.load %arg9[%c40_40, %c0_41] : memref<64x128xf32, #tpu.memory_space<vmem>>, vector<8x128xf32>
    tpu.vector_store %arg9[%c40_40, %c0_41], %43 {strides = array<i32>} : memref<64x128xf32, #tpu.memory_space<vmem>>, vector<8x128xf32>,
    %c48 = arith.constant 48 : index
    %c0_42 = arith.constant 0 : index
    %45 = vector.load %arg9[%c48, %c0_42] : memref<64x128xf32, #tpu.memory_space<vmem>>, vector<8x128xf32>
    %cst_43 = arith.constant dense<0.000000e+00> : vector<8x128xf32>
    %46 = tpu.matmul %43, %13, %cst_43 {dimension_numbers = #tpu.dot_dimension_numbers<[1], [0], [0], [1], [0, 0, 1, 1], [], []>} : vector<8x128xf32>, vector<128x128xf32>, vector<8x128xf32> -> vector<8x128xf32>
    %47 = arith.addf %45, %46 : vector<8x128xf32>
    %48 = math.tanh %47 : vector<8x128xf32>
    %c48_44 = arith.constant 48 : index
    %c0_45 = arith.constant 0 : index
    %49 = vector.load %arg9[%c48_44, %c0_45] : memref<64x128xf32, #tpu.memory_space<vmem>>, vector<8x128xf32>
    tpu.vector_store %arg9[%c48_44, %c0_45], %48 {strides = array<i32>} : memref<64x128xf32, #tpu.memory_space<vmem>>, vector<8x128xf32>,
    %c56 = arith.constant 56 : index
    %c0_46 = arith.constant 0 : index
    %50 = vector.load %arg9[%c56, %c0_46] : memref<64x128xf32, #tpu.memory_space<vmem>>, vector<8x128xf32>
    %cst_47 = arith.constant dense<0.000000e+00> : vector<8x128xf32>
    %51 = tpu.matmul %48, %13, %cst_47 {dimension_numbers = #tpu.dot_dimension_numbers<[1], [0], [0], [1], [0, 0, 1, 1], [], []>} : vector<8x128xf32>, vector<128x128xf32>, vector<8x128xf32> -> vector<8x128xf32>
    %52 = arith.addf %50, %51 : vector<8x128xf32>
    %53 = math.tanh %52 : vector<8x128xf32>
    %c56_48 = arith.constant 56 : index
    %c0_49 = arith.constant 0 : index
    %54 = vector.load %arg9[%c56_48, %c0_49] : memref<64x128xf32, #tpu.memory_space<vmem>>, vector<8x128xf32>
    tpu.vector_store %arg9[%c56_48, %c0_49], %53 {strides = array<i32>} : memref<64x128xf32, #tpu.memory_space<vmem>>, vector<8x128xf32>,
    %c0_50 = arith.constant 0 : index
    %c0_51 = arith.constant 0 : index
    %55 = vector.load %arg9[%c0_50, %c0_51] : memref<64x128xf32, #tpu.memory_space<vmem>>, vector<64x128xf32>
    %c1 = arith.constant 1 : index
    %c0_52 = arith.constant 0 : index
    %c0_53 = arith.constant 0 : index
    %56 = vector.load %arg3[%c1, %c0_52, %c0_53] : memref<3x128x128xf32, #tpu.memory_space<vmem>>, vector<1x128x128xf32>
    %57 = vector.shape_cast %56 : vector<1x128x128xf32> to vector<128x128xf32>
    %cst_54 = arith.constant dense<0.000000e+00> : vector<64x128xf32>
    %58 = tpu.matmul %55, %57, %cst_54 {dimension_numbers = #tpu.dot_dimension_numbers<[1], [0], [0], [1], [0, 0, 1, 1], [], []>} : vector<64x128xf32>, vector<128x128xf32>, vector<64x128xf32> -> vector<64x128xf32>
    %c1_55 = arith.constant 1 : index
    %c0_56 = arith.constant 0 : index
    %c0_57 = arith.constant 0 : index
    %59 = vector.load %arg5[%c1_55, %c0_56, %c0_57] : memref<3x1x128xf32, #tpu.memory_space<vmem>>, vector<1x1x128xf32>
    %60 = vector.shape_cast %59 : vector<1x1x128xf32> to vector<1x128xf32>
    %61 = vector.broadcast %60 : vector<1x128xf32> to vector<64x128xf32>
    %62 = arith.addf %58, %61 : vector<64x128xf32>
    %c0_58 = arith.constant 0 : index
    %c0_59 = arith.constant 0 : index
    %63 = vector.load %arg9[%c0_58, %c0_59] : memref<64x128xf32, #tpu.memory_space<vmem>>, vector<64x128xf32>
    tpu.vector_store %arg9[%c0_58, %c0_59], %62 {strides = array<i32>} : memref<64x128xf32, #tpu.memory_space<vmem>>, vector<64x128xf32>,
    %c1_60 = arith.constant 1 : index
    %c0_61 = arith.constant 0 : index
    %c0_62 = arith.constant 0 : index
    %64 = vector.load %arg4[%c1_60, %c0_61, %c0_62] : memref<3x128x128xf32, #tpu.memory_space<vmem>>, vector<1x128x128xf32>
    %65 = vector.shape_cast %64 : vector<1x128x128xf32> to vector<128x128xf32>
    %cst_63 = arith.constant 0.000000e+00 : f32
    %66 = vector.broadcast %cst_63 : f32 to vector<8x128xf32>
    %c0_64 = arith.constant 0 : index
    %c0_65 = arith.constant 0 : index
    %67 = vector.load %arg9[%c0_64, %c0_65] : memref<64x128xf32, #tpu.memory_space<vmem>>, vector<8x128xf32>
    %cst_66 = arith.constant dense<0.000000e+00> : vector<8x128xf32>
    %68 = tpu.matmul %66, %65, %cst_66 {dimension_numbers = #tpu.dot_dimension_numbers<[1], [0], [0], [1], [0, 0, 1, 1], [], []>} : vector<8x128xf32>, vector<128x128xf32>, vector<8x128xf32> -> vector<8x128xf32>
    %69 = arith.addf %67, %68 : vector<8x128xf32>
    %70 = math.tanh %69 : vector<8x128xf32>
    %c0_67 = arith.constant 0 : index
    %c0_68 = arith.constant 0 : index
    %71 = vector.load %arg9[%c0_67, %c0_68] : memref<64x128xf32, #tpu.memory_space<vmem>>, vector<8x128xf32>
    tpu.vector_store %arg9[%c0_67, %c0_68], %70 {strides = array<i32>} : memref<64x128xf32, #tpu.memory_space<vmem>>, vector<8x128xf32>,
    %c8_69 = arith.constant 8 : index
    %c0_70 = arith.constant 0 : index
    %72 = vector.load %arg9[%c8_69, %c0_70] : memref<64x128xf32, #tpu.memory_space<vmem>>, vector<8x128xf32>
    %cst_71 = arith.constant dense<0.000000e+00> : vector<8x128xf32>
    %73 = tpu.matmul %70, %65, %cst_71 {dimension_numbers = #tpu.dot_dimension_numbers<[1], [0], [0], [1], [0, 0, 1, 1], [], []>} : vector<8x128xf32>, vector<128x128xf32>, vector<8x128xf32> -> vector<8x128xf32>
    %74 = arith.addf %72, %73 : vector<8x128xf32>
    %75 = math.tanh %74 : vector<8x128xf32>
    %c8_72 = arith.constant 8 : index
    %c0_73 = arith.constant 0 : index
    %76 = vector.load %arg9[%c8_72, %c0_73] : memref<64x128xf32, #tpu.memory_space<vmem>>, vector<8x128xf32>
    tpu.vector_store %arg9[%c8_72, %c0_73], %75 {strides = array<i32>} : memref<64x128xf32, #tpu.memory_space<vmem>>, vector<8x128xf32>,
    %c16_74 = arith.constant 16 : index
    %c0_75 = arith.constant 0 : index
    %77 = vector.load %arg9[%c16_74, %c0_75] : memref<64x128xf32, #tpu.memory_space<vmem>>, vector<8x128xf32>
    %cst_76 = arith.constant dense<0.000000e+00> : vector<8x128xf32>
    %78 = tpu.matmul %75, %65, %cst_76 {dimension_numbers = #tpu.dot_dimension_numbers<[1], [0], [0], [1], [0, 0, 1, 1], [], []>} : vector<8x128xf32>, vector<128x128xf32>, vector<8x128xf32> -> vector<8x128xf32>
    %79 = arith.addf %77, %78 : vector<8x128xf32>
    %80 = math.tanh %79 : vector<8x128xf32>
    %c16_77 = arith.constant 16 : index
    %c0_78 = arith.constant 0 : index
    %81 = vector.load %arg9[%c16_77, %c0_78] : memref<64x128xf32, #tpu.memory_space<vmem>>, vector<8x128xf32>
    tpu.vector_store %arg9[%c16_77, %c0_78], %80 {strides = array<i32>} : memref<64x128xf32, #tpu.memory_space<vmem>>, vector<8x128xf32>,
    %c24_79 = arith.constant 24 : index
    %c0_80 = arith.constant 0 : index
    %82 = vector.load %arg9[%c24_79, %c0_80] : memref<64x128xf32, #tpu.memory_space<vmem>>, vector<8x128xf32>
    %cst_81 = arith.constant dense<0.000000e+00> : vector<8x128xf32>
    %83 = tpu.matmul %80, %65, %cst_81 {dimension_numbers = #tpu.dot_dimension_numbers<[1], [0], [0], [1], [0, 0, 1, 1], [], []>} : vector<8x128xf32>, vector<128x128xf32>, vector<8x128xf32> -> vector<8x128xf32>
    %84 = arith.addf %82, %83 : vector<8x128xf32>
    %85 = math.tanh %84 : vector<8x128xf32>
    %c24_82 = arith.constant 24 : index
    %c0_83 = arith.constant 0 : index
    %86 = vector.load %arg9[%c24_82, %c0_83] : memref<64x128xf32, #tpu.memory_space<vmem>>, vector<8x128xf32>
    tpu.vector_store %arg9[%c24_82, %c0_83], %85 {strides = array<i32>} : memref<64x128xf32, #tpu.memory_space<vmem>>, vector<8x128xf32>,
    %c32_84 = arith.constant 32 : index
    %c0_85 = arith.constant 0 : index
    %87 = vector.load %arg9[%c32_84, %c0_85] : memref<64x128xf32, #tpu.memory_space<vmem>>, vector<8x128xf32>
    %cst_86 = arith.constant dense<0.000000e+00> : vector<8x128xf32>
    %88 = tpu.matmul %85, %65, %cst_86 {dimension_numbers = #tpu.dot_dimension_numbers<[1], [0], [0], [1], [0, 0, 1, 1], [], []>} : vector<8x128xf32>, vector<128x128xf32>, vector<8x128xf32> -> vector<8x128xf32>
    %89 = arith.addf %87, %88 : vector<8x128xf32>
    %90 = math.tanh %89 : vector<8x128xf32>
    %c32_87 = arith.constant 32 : index
    %c0_88 = arith.constant 0 : index
    %91 = vector.load %arg9[%c32_87, %c0_88] : memref<64x128xf32, #tpu.memory_space<vmem>>, vector<8x128xf32>
    tpu.vector_store %arg9[%c32_87, %c0_88], %90 {strides = array<i32>} : memref<64x128xf32, #tpu.memory_space<vmem>>, vector<8x128xf32>,
    %c40_89 = arith.constant 40 : index
    %c0_90 = arith.constant 0 : index
    %92 = vector.load %arg9[%c40_89, %c0_90] : memref<64x128xf32, #tpu.memory_space<vmem>>, vector<8x128xf32>
    %cst_91 = arith.constant dense<0.000000e+00> : vector<8x128xf32>
    %93 = tpu.matmul %90, %65, %cst_91 {dimension_numbers = #tpu.dot_dimension_numbers<[1], [0], [0], [1], [0, 0, 1, 1], [], []>} : vector<8x128xf32>, vector<128x128xf32>, vector<8x128xf32> -> vector<8x128xf32>
    %94 = arith.addf %92, %93 : vector<8x128xf32>
    %95 = math.tanh %94 : vector<8x128xf32>
    %c40_92 = arith.constant 40 : index
    %c0_93 = arith.constant 0 : index
    %96 = vector.load %arg9[%c40_92, %c0_93] : memref<64x128xf32, #tpu.memory_space<vmem>>, vector<8x128xf32>
    tpu.vector_store %arg9[%c40_92, %c0_93], %95 {strides = array<i32>} : memref<64x128xf32, #tpu.memory_space<vmem>>, vector<8x128xf32>,
    %c48_94 = arith.constant 48 : index
    %c0_95 = arith.constant 0 : index
    %97 = vector.load %arg9[%c48_94, %c0_95] : memref<64x128xf32, #tpu.memory_space<vmem>>, vector<8x128xf32>
    %cst_96 = arith.constant dense<0.000000e+00> : vector<8x128xf32>
    %98 = tpu.matmul %95, %65, %cst_96 {dimension_numbers = #tpu.dot_dimension_numbers<[1], [0], [0], [1], [0, 0, 1, 1], [], []>} : vector<8x128xf32>, vector<128x128xf32>, vector<8x128xf32> -> vector<8x128xf32>
    %99 = arith.addf %97, %98 : vector<8x128xf32>
    %100 = math.tanh %99 : vector<8x128xf32>
    %c48_97 = arith.constant 48 : index
    %c0_98 = arith.constant 0 : index
    %101 = vector.load %arg9[%c48_97, %c0_98] : memref<64x128xf32, #tpu.memory_space<vmem>>, vector<8x128xf32>
    tpu.vector_store %arg9[%c48_97, %c0_98], %100 {strides = array<i32>} : memref<64x128xf32, #tpu.memory_space<vmem>>, vector<8x128xf32>,
    %c56_99 = arith.constant 56 : index
    %c0_100 = arith.constant 0 : index
    %102 = vector.load %arg9[%c56_99, %c0_100] : memref<64x128xf32, #tpu.memory_space<vmem>>, vector<8x128xf32>
    %cst_101 = arith.constant dense<0.000000e+00> : vector<8x128xf32>
    %103 = tpu.matmul %100, %65, %cst_101 {dimension_numbers = #tpu.dot_dimension_numbers<[1], [0], [0], [1], [0, 0, 1, 1], [], []>} : vector<8x128xf32>, vector<128x128xf32>, vector<8x128xf32> -> vector<8x128xf32>
    %104 = arith.addf %102, %103 : vector<8x128xf32>
    %105 = math.tanh %104 : vector<8x128xf32>
    %c56_102 = arith.constant 56 : index
    %c0_103 = arith.constant 0 : index
    %106 = vector.load %arg9[%c56_102, %c0_103] : memref<64x128xf32, #tpu.memory_space<vmem>>, vector<8x128xf32>
    tpu.vector_store %arg9[%c56_102, %c0_103], %105 {strides = array<i32>} : memref<64x128xf32, #tpu.memory_space<vmem>>, vector<8x128xf32>,
    %c0_104 = arith.constant 0 : index
    %c0_105 = arith.constant 0 : index
    %107 = vector.load %arg9[%c0_104, %c0_105] : memref<64x128xf32, #tpu.memory_space<vmem>>, vector<64x128xf32>
    %c2 = arith.constant 2 : index
    %c0_106 = arith.constant 0 : index
    %c0_107 = arith.constant 0 : index
    %108 = vector.load %arg3[%c2, %c0_106, %c0_107] : memref<3x128x128xf32, #tpu.memory_space<vmem>>, vector<1x128x128xf32>
    %109 = vector.shape_cast %108 : vector<1x128x128xf32> to vector<128x128xf32>
    %cst_108 = arith.constant dense<0.000000e+00> : vector<64x128xf32>
    %110 = tpu.matmul %107, %109, %cst_108 {dimension_numbers = #tpu.dot_dimension_numbers<[1], [0], [0], [1], [0, 0, 1, 1], [], []>} : vector<64x128xf32>, vector<128x128xf32>, vector<64x128xf32> -> vector<64x128xf32>
    %c2_109 = arith.constant 2 : index
    %c0_110 = arith.constant 0 : index
    %c0_111 = arith.constant 0 : index
    %111 = vector.load %arg5[%c2_109, %c0_110, %c0_111] : memref<3x1x128xf32, #tpu.memory_space<vmem>>, vector<1x1x128xf32>
    %112 = vector.shape_cast %111 : vector<1x1x128xf32> to vector<1x128xf32>
    %113 = vector.broadcast %112 : vector<1x128xf32> to vector<64x128xf32>
    %114 = arith.addf %110, %113 : vector<64x128xf32>
    %c0_112 = arith.constant 0 : index
    %c0_113 = arith.constant 0 : index
    %115 = vector.load %arg9[%c0_112, %c0_113] : memref<64x128xf32, #tpu.memory_space<vmem>>, vector<64x128xf32>
    tpu.vector_store %arg9[%c0_112, %c0_113], %114 {strides = array<i32>} : memref<64x128xf32, #tpu.memory_space<vmem>>, vector<64x128xf32>,
    %c2_114 = arith.constant 2 : index
    %c0_115 = arith.constant 0 : index
    %c0_116 = arith.constant 0 : index
    %116 = vector.load %arg4[%c2_114, %c0_115, %c0_116] : memref<3x128x128xf32, #tpu.memory_space<vmem>>, vector<1x128x128xf32>
    %117 = vector.shape_cast %116 : vector<1x128x128xf32> to vector<128x128xf32>
    %cst_117 = arith.constant 0.000000e+00 : f32
    %118 = vector.broadcast %cst_117 : f32 to vector<8x128xf32>
    %c0_118 = arith.constant 0 : index
    %c0_119 = arith.constant 0 : index
    %119 = vector.load %arg9[%c0_118, %c0_119] : memref<64x128xf32, #tpu.memory_space<vmem>>, vector<8x128xf32>
    %cst_120 = arith.constant dense<0.000000e+00> : vector<8x128xf32>
    %120 = tpu.matmul %118, %117, %cst_120 {dimension_numbers = #tpu.dot_dimension_numbers<[1], [0], [0], [1], [0, 0, 1, 1], [], []>} : vector<8x128xf32>, vector<128x128xf32>, vector<8x128xf32> -> vector<8x128xf32>
    %121 = arith.addf %119, %120 : vector<8x128xf32>
    %122 = math.tanh %121 : vector<8x128xf32>
    %c1_i32 = arith.constant 1 : i32
    %123 = vector.broadcast %c1_i32 : i32 to vector<8x128xi32>
    %124 = arith.cmpi eq, %0, %123 : vector<8x128xi32>
    %125 = arith.select %124, %122, %1 : vector<8x128xi1>, vector<8x128xf32>
    %c8_121 = arith.constant 8 : index
    %c0_122 = arith.constant 0 : index
    %126 = vector.load %arg9[%c8_121, %c0_122] : memref<64x128xf32, #tpu.memory_space<vmem>>, vector<8x128xf32>
    %cst_123 = arith.constant dense<0.000000e+00> : vector<8x128xf32>
    %127 = tpu.matmul %122, %117, %cst_123 {dimension_numbers = #tpu.dot_dimension_numbers<[1], [0], [0], [1], [0, 0, 1, 1], [], []>} : vector<8x128xf32>, vector<128x128xf32>, vector<8x128xf32> -> vector<8x128xf32>
    %128 = arith.addf %126, %127 : vector<8x128xf32>
    %129 = math.tanh %128 : vector<8x128xf32>
    %c2_i32 = arith.constant 2 : i32
    %130 = vector.broadcast %c2_i32 : i32 to vector<8x128xi32>
    %131 = arith.cmpi eq, %0, %130 : vector<8x128xi32>
    %132 = arith.select %131, %129, %125 : vector<8x128xi1>, vector<8x128xf32>
    %c16_124 = arith.constant 16 : index
    %c0_125 = arith.constant 0 : index
    %133 = vector.load %arg9[%c16_124, %c0_125] : memref<64x128xf32, #tpu.memory_space<vmem>>, vector<8x128xf32>
    %cst_126 = arith.constant dense<0.000000e+00> : vector<8x128xf32>
    %134 = tpu.matmul %129, %117, %cst_126 {dimension_numbers = #tpu.dot_dimension_numbers<[1], [0], [0], [1], [0, 0, 1, 1], [], []>} : vector<8x128xf32>, vector<128x128xf32>, vector<8x128xf32> -> vector<8x128xf32>
    %135 = arith.addf %133, %134 : vector<8x128xf32>
    %136 = math.tanh %135 : vector<8x128xf32>
    %c3_i32 = arith.constant 3 : i32
    %137 = vector.broadcast %c3_i32 : i32 to vector<8x128xi32>
    %138 = arith.cmpi eq, %0, %137 : vector<8x128xi32>
    %139 = arith.select %138, %136, %132 : vector<8x128xi1>, vector<8x128xf32>
    %c24_127 = arith.constant 24 : index
    %c0_128 = arith.constant 0 : index
    %140 = vector.load %arg9[%c24_127, %c0_128] : memref<64x128xf32, #tpu.memory_space<vmem>>, vector<8x128xf32>
    %cst_129 = arith.constant dense<0.000000e+00> : vector<8x128xf32>
    %141 = tpu.matmul %136, %117, %cst_129 {dimension_numbers = #tpu.dot_dimension_numbers<[1], [0], [0], [1], [0, 0, 1, 1], [], []>} : vector<8x128xf32>, vector<128x128xf32>, vector<8x128xf32> -> vector<8x128xf32>
    %142 = arith.addf %140, %141 : vector<8x128xf32>
    %143 = math.tanh %142 : vector<8x128xf32>
    %c4_i32 = arith.constant 4 : i32
    %144 = vector.broadcast %c4_i32 : i32 to vector<8x128xi32>
    %145 = arith.cmpi eq, %0, %144 : vector<8x128xi32>
    %146 = arith.select %145, %143, %139 : vector<8x128xi1>, vector<8x128xf32>
    %c32_130 = arith.constant 32 : index
    %c0_131 = arith.constant 0 : index
    %147 = vector.load %arg9[%c32_130, %c0_131] : memref<64x128xf32, #tpu.memory_space<vmem>>, vector<8x128xf32>
    %cst_132 = arith.constant dense<0.000000e+00> : vector<8x128xf32>
    %148 = tpu.matmul %143, %117, %cst_132 {dimension_numbers = #tpu.dot_dimension_numbers<[1], [0], [0], [1], [0, 0, 1, 1], [], []>} : vector<8x128xf32>, vector<128x128xf32>, vector<8x128xf32> -> vector<8x128xf32>
    %149 = arith.addf %147, %148 : vector<8x128xf32>
    %150 = math.tanh %149 : vector<8x128xf32>
    %c5_i32 = arith.constant 5 : i32
    %151 = vector.broadcast %c5_i32 : i32 to vector<8x128xi32>
    %152 = arith.cmpi eq, %0, %151 : vector<8x128xi32>
    %153 = arith.select %152, %150, %146 : vector<8x128xi1>, vector<8x128xf32>
    %c40_133 = arith.constant 40 : index
    %c0_134 = arith.constant 0 : index
    %154 = vector.load %arg9[%c40_133, %c0_134] : memref<64x128xf32, #tpu.memory_space<vmem>>, vector<8x128xf32>
    %cst_135 = arith.constant dense<0.000000e+00> : vector<8x128xf32>
    %155 = tpu.matmul %150, %117, %cst_135 {dimension_numbers = #tpu.dot_dimension_numbers<[1], [0], [0], [1], [0, 0, 1, 1], [], []>} : vector<8x128xf32>, vector<128x128xf32>, vector<8x128xf32> -> vector<8x128xf32>
    %156 = arith.addf %154, %155 : vector<8x128xf32>
    %157 = math.tanh %156 : vector<8x128xf32>
    %c6_i32 = arith.constant 6 : i32
    %158 = vector.broadcast %c6_i32 : i32 to vector<8x128xi32>
    %159 = arith.cmpi eq, %0, %158 : vector<8x128xi32>
    %160 = arith.select %159, %157, %153 : vector<8x128xi1>, vector<8x128xf32>
    %c48_136 = arith.constant 48 : index
    %c0_137 = arith.constant 0 : index
    %161 = vector.load %arg9[%c48_136, %c0_137] : memref<64x128xf32, #tpu.memory_space<vmem>>, vector<8x128xf32>
    %cst_138 = arith.constant dense<0.000000e+00> : vector<8x128xf32>
    %162 = tpu.matmul %157, %117, %cst_138 {dimension_numbers = #tpu.dot_dimension_numbers<[1], [0], [0], [1], [0, 0, 1, 1], [], []>} : vector<8x128xf32>, vector<128x128xf32>, vector<8x128xf32> -> vector<8x128xf32>
    %163 = arith.addf %161, %162 : vector<8x128xf32>
    %164 = math.tanh %163 : vector<8x128xf32>
    %c7_i32 = arith.constant 7 : i32
    %165 = vector.broadcast %c7_i32 : i32 to vector<8x128xi32>
    %166 = arith.cmpi eq, %0, %165 : vector<8x128xi32>
    %167 = arith.select %166, %164, %160 : vector<8x128xi1>, vector<8x128xf32>
    %c56_139 = arith.constant 56 : index
    %c0_140 = arith.constant 0 : index
    %168 = vector.load %arg9[%c56_139, %c0_140] : memref<64x128xf32, #tpu.memory_space<vmem>>, vector<8x128xf32>
    %cst_141 = arith.constant dense<0.000000e+00> : vector<8x128xf32>
    %169 = tpu.matmul %164, %117, %cst_141 {dimension_numbers = #tpu.dot_dimension_numbers<[1], [0], [0], [1], [0, 0, 1, 1], [], []>} : vector<8x128xf32>, vector<128x128xf32>, vector<8x128xf32> -> vector<8x128xf32>
    %170 = arith.addf %168, %169 : vector<8x128xf32>
    %171 = math.tanh %170 : vector<8x128xf32>
    %c8_i32 = arith.constant 8 : i32
    %172 = vector.broadcast %c8_i32 : i32 to vector<8x128xi32>
    %173 = arith.cmpi eq, %0, %172 : vector<8x128xi32>
    %174 = arith.select %173, %171, %167 : vector<8x128xi1>, vector<8x128xf32>
    %c0_142 = arith.constant 0 : index
    %c0_143 = arith.constant 0 : index
    %175 = vector.load %arg6[%c0_142, %c0_143] : memref<128x512xf32, #tpu.memory_space<vmem>>, vector<128x512xf32>
    %cst_144 = arith.constant dense<0.000000e+00> : vector<8x512xf32>
    %176 = tpu.matmul %174, %175, %cst_144 {dimension_numbers = #tpu.dot_dimension_numbers<[1], [0], [0], [1], [0, 0, 1, 1], [], []>} : vector<8x128xf32>, vector<128x512xf32>, vector<8x512xf32> -> vector<8x512xf32>
    %c0_145 = arith.constant 0 : index
    %c0_146 = arith.constant 0 : index
    %177 = vector.load %arg7[%c0_145, %c0_146] : memref<1x512xf32, #tpu.memory_space<vmem>>, vector<1x512xf32>
    %178 = vector.broadcast %177 : vector<1x512xf32> to vector<8x512xf32>
    %179 = arith.addf %176, %178 : vector<8x512xf32>
    %c0_147 = arith.constant 0 : index
    %c0_148 = arith.constant 0 : index
    %180 = vector.load %arg8[%c0_147, %c0_148] : memref<8x512xf32, #tpu.memory_space<vmem>>, vector<8x512xf32>
    tpu.vector_store %arg8[%c0_147, %c0_148], %179 {strides = array<i32>} : memref<8x512xf32, #tpu.memory_space<vmem>>, vector<8x512xf32>,
    return
  }
  func.func @transform_0(%arg0: i32) -> (i32, i32) {
    %c0_i32 = arith.constant 0 : i32
    %c0_i32_0 = arith.constant 0 : i32
    return %arg0, %c0_i32 : i32, i32
  }
  func.func @transform_1(%arg0: i32) -> (i32, i32, i32) {
    %c0_i32 = arith.constant 0 : i32
    %c0_i32_0 = arith.constant 0 : i32
    %c0_i32_1 = arith.constant 0 : i32
    return %c0_i32, %arg0, %c0_i32_0 : i32, i32, i32
  }
  func.func @transform_2(%arg0: i32) -> (i32, i32, i32) {
    %c0_i32 = arith.constant 0 : i32
    %c0_i32_0 = arith.constant 0 : i32
    %c0_i32_1 = arith.constant 0 : i32
    %c0_i32_2 = arith.constant 0 : i32
    return %c0_i32, %c0_i32_0, %c0_i32_1 : i32, i32, i32
  }
  func.func @transform_3(%arg0: i32) -> (i32, i32, i32) {
    %c0_i32 = arith.constant 0 : i32
    %c0_i32_0 = arith.constant 0 : i32
    %c0_i32_1 = arith.constant 0 : i32
    %c0_i32_2 = arith.constant 0 : i32
    return %c0_i32, %c0_i32_0, %c0_i32_1 : i32, i32, i32
  }
  func.func @transform_4(%arg0: i32) -> (i32, i32, i32) {
    %c0_i32 = arith.constant 0 : i32
    %c0_i32_0 = arith.constant 0 : i32
    %c0_i32_1 = arith.constant 0 : i32
    %c0_i32_2 = arith.constant 0 : i32
    return %c0_i32, %c0_i32_0, %c0_i32_1 : i32, i32, i32
  }
  func.func @transform_5(%arg0: i32) -> (i32, i32) {
    %c0_i32 = arith.constant 0 : i32
    %c0_i32_0 = arith.constant 0 : i32
    %c0_i32_1 = arith.constant 0 : i32
    return %c0_i32, %c0_i32_0 : i32, i32
  }
  func.func @transform_6(%arg0: i32) -> (i32, i32) {
    %c0_i32 = arith.constant 0 : i32
    %c0_i32_0 = arith.constant 0 : i32
    %c0_i32_1 = arith.constant 0 : i32
    return %c0_i32, %c0_i32_0 : i32, i32
  }
  func.func @transform_7(%arg0: i32) -> (i32, i32) {
    %c0_i32 = arith.constant 0 : i32
    %c0_i32_0 = arith.constant 0 : i32
    return %arg0, %c0_i32 : i32, i32
  }
}

</mosaic_0001>

<bundles_post_ra>
// kernel: tpu_custom_call.1
= control target key start
LH: loop header
LB: loop body
LE: loop exit
PB: predicated region body
PF: predicated region fallthrough
CT: control target
= control target key end

     0   :  { %12 = vsyncpa [#allocation4], 0  ;;  %s5775_s0 = inlined_call_operand.hbm [shape: s32[8,128], index: 0, kind: input, shape index: {}]   ;;  %s5776_s1 = inlined_call_operand.hbm [shape: f32[8,8,128], index: 1, kind: input, shape index: {}]   ;;  %s5777_s2 = inlined_call_operand.hbm [shape: f32[3,128,128], index: 2, kind: input, shape index: {}]   ;;  %s5778_s3 = inlined_call_operand.hbm [shape: f32[3,128,128], index: 3, kind: input, shape index: {}]   ;;  %s5779_s4 = inlined_call_operand.vmem [shape: f32[3,1,128], index: 4, kind: input, shape index: {}]   ;;  %s5780_s5 = inlined_call_operand.hbm [shape: f32[128,512], index: 5, kind: input, shape index: {}]   ;;  %s5781_s6 = inlined_call_operand.vmem [shape: f32[1,512], index: 6, kind: input, shape index: {}]   ;;  %s5782_s7 = inlined_call_operand.hbm [shape: f32[8,512], index: 7, kind: output, shape index: {}]  }
   0x1   :  { %13 = vsyncpa [#allocation7], 0 }
   0x2   :  { %14 = vsyncpa [#allocation10], 0 }
   0x3   :  { %15 = vsyncpa [#allocation5], 0  ;;  %s5007_s24 = smov [#allocation6]   ;;  %s4867_s28 = scalar_lea.hbm %s5776_s1, 1024 }
   0x4   :  { %s31_s25 = sshll.u32 %s5007_s24, 4  ;;  %p4868_p0 = scmp.ne.s32.totalorder %s5776_s1, %s4867_s28  ;;  %s32_s25 = int_to_ptr.vmem [resolvable:$true] %s31_s25 }
   0x5   :  { %p4871_p1 = scmp.lt.u32.totalorder %s4867_s28, %s5776_s1 }
   0x7   :  { %p4873_p2 = pnand %p4871_p1, %p4868_p0 }
   0x9   :  { %4876 = shalt.err (!%p4873_p2)
}
   0xa   :  { %s4877_s10 = scalar_lea.vmem %s32_s25, 1024  ;;  %p4882_p4 = scmp.lt.s32.totalorder %s32_s25, %s32_s25 }
   0xb   :  { %p4878_p3 = scmp.ne.s32.totalorder %s32_s25, %s4877_s10  ;;  %p4883_p5 = scmp.lt.s32.totalorder %s4877_s10, %s4877_s10 }
   0xd   :  { %p4884_p6 = por %p4883_p5, %p4882_p4 }
   0xf   :  { %p4885_p7 = pnand %p4884_p6, %p4878_p3 }
  0x11   :  { %4888 = shalt.err (!%p4885_p7)
}
  0x12   :  { %s5008_s11 = smov 128   ;;  %s5009_s12 = smov 8  }
  0x13   :  { %37 = dma.hbm_to_vmem [thread:$0]  %s5776_s1, 1024, %s32_s25, [#allocation7], %s5008_s11, %s5008_s11, %s5009_s12  }
  0x14   :  { %s5010_s15 = smov [#allocation9]   ;;  %s5011_s17 = smov [#allocation3]  }
  0x15   :  { %s55_s16 = sshll.u32 %s5010_s15, 4  ;;  %s22_s18 = sshll.u32 %s5011_s17, 4  ;;  %s56_s16 = int_to_ptr.vmem [resolvable:$true] %s55_s16  ;;  %s23_s18 = int_to_ptr.vmem [resolvable:$true] %s22_s18 }
  0x16   :  { %s4889_s21 = scalar_lea.hbm %s5778_s3, 6144 }
  0x17   :  { %p4890_p8 = scmp.ne.s32.totalorder %s5778_s3, %s4889_s21  ;;  %p4893_p9 = scmp.lt.u32.totalorder %s4889_s21, %s5778_s3 }
  0x19   :  { %p4895_p10 = pnand %p4893_p9, %p4890_p8 }
  0x1b   :  { %4898 = shalt.err (!%p4895_p10)
}
  0x1c   :  { %s4899_s1 = scalar_lea.vmem %s56_s16, 6144  ;;  %p4904_p12 = scmp.lt.s32.totalorder %s56_s16, %s56_s16 }
  0x1d   :  { %p4900_p11 = scmp.ne.s32.totalorder %s56_s16, %s4899_s1  ;;  %p4905_p13 = scmp.lt.s32.totalorder %s4899_s1, %s4899_s1 }
  0x1f   :  { %p4906_p0 = por %p4905_p13, %p4904_p12 }
  0x21   :  { %p4907_p1 = pnand %p4906_p0, %p4900_p11 }
  0x23   :  { %4910 = shalt.err (!%p4907_p1)
}
  0x24   :  { %61 = dma.hbm_to_vmem [thread:$0]  %s5778_s3, 6144, %s56_s16, [#allocation10], %s5008_s11, %s5008_s11, %s5009_s12  }
  0x25   :  { %s4911_s30 = scalar_lea.hbm %s5775_s0, 128 }
  0x26   :  { %p4912_p2 = scmp.ne.s32.totalorder %s5775_s0, %s4911_s30  ;;  %p4915_p3 = scmp.lt.u32.totalorder %s4911_s30, %s5775_s0 }
  0x28   :  { %p4917_p4 = pnand %p4915_p3, %p4912_p2 }
  0x2a   :  { %4920 = shalt.err (!%p4917_p4)
}
  0x2b   :  { %s4921_s14 = scalar_lea.vmem %s23_s18, 128  ;;  %p4926_p6 = scmp.lt.s32.totalorder %s23_s18, %s23_s18 }
  0x2c   :  { %p4922_p5 = scmp.ne.s32.totalorder %s23_s18, %s4921_s14  ;;  %p4927_p7 = scmp.lt.s32.totalorder %s4921_s14, %s4921_s14 }
  0x2e   :  { %p4928_p8 = por %p4927_p7, %p4926_p6 }
  0x30   :  { %p4929_p9 = pnand %p4928_p8, %p4922_p5 }
  0x32   :  { %4932 = shalt.err (!%p4929_p9)
}
  0x33   :  { %25 = dma.hbm_to_vmem [thread:$0]  %s5775_s0, 128, %s23_s18, [#allocation4]  }
  0x34   :  { %s5012_s16 = smov [#allocation8]   ;;  %s5013_s19 = smov [#allocation11]  }
  0x35   :  { %s43_s17 = sshll.u32 %s5012_s16, 4  ;;  %s69_s20 = sshll.u32 %s5013_s19, 4  ;;  %s44_s17 = int_to_ptr.vmem [resolvable:$true] %s43_s17  ;;  %s70_s20 = int_to_ptr.vmem [resolvable:$true] %s69_s20 }
  0x36   :  { %s4933_s23 = scalar_lea.hbm %s5777_s2, 6144 }
  0x37   :  { %p4934_p10 = scmp.ne.s32.totalorder %s5777_s2, %s4933_s23  ;;  %p4937_p11 = scmp.lt.u32.totalorder %s4933_s23, %s5777_s2 }
  0x39   :  { %p4939_p12 = pnand %p4937_p11, %p4934_p10 }
  0x3b   :  { %4942 = shalt.err (!%p4939_p12)
}
  0x3c   :  { %s4943_s0 = scalar_lea.vmem %s44_s17, 6144  ;;  %p4948_p0 = scmp.lt.s32.totalorder %s44_s17, %s44_s17 }
  0x3d   :  { %p4944_p13 = scmp.ne.s32.totalorder %s44_s17, %s4943_s0  ;;  %p4949_p1 = scmp.lt.s32.totalorder %s4943_s0, %s4943_s0 }
  0x3f   :  { %p4950_p2 = por %p4949_p1, %p4948_p0 }
  0x41   :  { %p4951_p3 = pnand %p4950_p2, %p4944_p13 }
  0x43   :  { %4954 = shalt.err (!%p4951_p3)
}
  0x44   :  { %49 = dma.hbm_to_vmem [thread:$0]  %s5777_s2, 6144, %s44_s17, [#allocation7], %s5008_s11, %s5008_s11, %s5009_s12  }
  0x45   :  { %s4955_s30 = scalar_lea.hbm %s5780_s5, 8192 }
  0x46   :  { %p4956_p4 = scmp.ne.s32.totalorder %s5780_s5, %s4955_s30  ;;  %p4959_p5 = scmp.lt.u32.totalorder %s4955_s30, %s5780_s5 }
  0x48   :  { %p4961_p6 = pnand %p4959_p5, %p4956_p4 }
  0x4a   :  { %4964 = shalt.err (!%p4961_p6)
}
  0x4b   :  { %s4965_s14 = scalar_lea.vmem %s70_s20, 8192  ;;  %p4970_p8 = scmp.lt.s32.totalorder %s70_s20, %s70_s20 }
  0x4c   :  { %p4966_p7 = scmp.ne.s32.totalorder %s70_s20, %s4965_s14  ;;  %p4971_p9 = scmp.lt.s32.totalorder %s4965_s14, %s4965_s14 }
  0x4e   :  { %p4972_p10 = por %p4971_p9, %p4970_p8 }
  0x50   :  { %p4973_p11 = pnand %p4972_p10, %p4966_p7 }
  0x52   :  { %4976 = shalt.err (!%p4973_p11)
}
  0x53   :  { %s5014_s2 = smov 512   ;;  %s5015_s11 = smov 32  }
  0x54   :  { %75 = dma.hbm_to_vmem [thread:$0]  %s5780_s5, 8192, %s70_s20, [#allocation10], %s5014_s2, %s5014_s2, %s5015_s11  }
  0x55   :  { %4999 = dma.done.wait [#allocation4], 128  }
  0x56   :  { %5000 = vsyncadd [#allocation4], 4294967168 }
  0x57   :  { %5001 = dma.done.wait [#allocation7], 7168  }
  0x58   :  { %5002 = vsyncadd [#allocation7], 4294960128 }
  0x59   :  { %5003 = dma.done.wait [#allocation10], 14336  }
  0x5a   :  { %5004 = vsyncadd [#allocation10], 4294952960  ;;  %v5016_v0 = vmov 0.0|0.0   ;;  %vm5017_vm0 = vmmov 0   ;;  %v5018_v1 = vmov 0.0   ;;  %v102_v2 = vld [vmem:[#allocation8] sm:$0xff] }
  0x5b   :  { %4102 = vmatprep.subr.bf16.mxu1 %v5016_v0  ;;  %3174 = vmatprep.mubr.msk.f32.mxu1 %vm5017_vm0, %v5018_v1  ;;  %v103_v3 = vld [vmem:[#allocation8 + $0x8] sm:$0xff]  ;;  %v238_v4 = vld [vmem:[#allocation9] sm:$0xff]  ;;  %v104_v7 = vld [vmem:[#allocation8 + $0x10] sm:$0xff]  ;;  %s5019_s22 = smov [#allocation12]  }
  0x5c   :  { %v4070_v5 = vpack.c.bf16 %v103_v3, %v102_v2  ;;  %v239_v6 = vld [vmem:[#allocation9 + $0x8] sm:$0xff]  ;;  %v105_v8 = vld [vmem:[#allocation8 + $0x18] sm:$0xff]  ;;  %v240_v11 = vld [vmem:[#allocation9 + $0x10] sm:$0xff]  ;;  %s2602_s23 = sshll.u32 %s5019_s22, 4  ;;  %s2603_s23 = int_to_ptr.vmem [resolvable:$true] %s2602_s23 }
  0x5d   :  { %v5132_v9 = vpack.c.bf16 %v239_v6, %v238_v4  ;;  %v4074_v10 = vpack.c.bf16 %v105_v8, %v104_v7  ;;  %v241_v12 = vld [vmem:[#allocation9 + $0x18] sm:$0xff]  ;;  %v106_v13 = vld [vmem:[#allocation8 + $0x20] sm:$0xff]  ;;  %v107_v14 = vld [vmem:[#allocation8 + $0x28] sm:$0xff]  ;;  %p4982_p13 = scmp.lt.s32.totalorder %s2603_s23, %s2603_s23 }
  0x5e   :  { %4071 = vmatprep.subr.bf16.mxu0 %v4070_v5  ;;  %v5135_v15 = vpack.c.bf16 %v241_v12, %v240_v11  ;;  %v4078_v16 = vpack.c.bf16 %v107_v14, %v106_v13  ;;  %v242_v17 = vld [vmem:[#allocation9 + $0x20] sm:$0xff]  ;;  %v243_v18 = vld [vmem:[#allocation9 + $0x28] sm:$0xff]  ;;  %v108_v19 = vld [vmem:[#allocation8 + $0x30] sm:$0xff] }
  0x5f   :  { %4073 = vmatpush3.bf16.msra.mxu0 %v4070_v5  ;;  %4104 = vmatpush3.bf16.msra.mxu1 %v5132_v9  ;;  %v109_v20 = vld [vmem:[#allocation8 + $0x38] sm:$0xff]  ;;  %v5139_v21 = vpack.c.bf16 %v243_v18, %v242_v17  ;;  %v244_v23 = vld [vmem:[#allocation9 + $0x30] sm:$0xff]  ;;  %v110_v25 = vld [vmem:[#allocation8 + $0x40] sm:$0xff] }
  0x60   :  { %4075 = vmatprep.subr.bf16.mxu0 %v4074_v10  ;;  %4105 = vmatprep.subr.bf16.mxu1 %v5016_v0  ;;  %v4082_v22 = vpack.c.bf16 %v109_v20, %v108_v19  ;;  %v245_v24 = vld [vmem:[#allocation9 + $0x38] sm:$0xff]  ;;  %v111_v26 = vld [vmem:[#allocation8 + $0x48] sm:$0xff]  ;;  %v94_v27 = vld [vmem:[#allocation6] sm:$0xff] }
  0x61   :  { %3130 = vmatprep.mubr.f32.mxu0 %v94_v27  ;;  %v5143_v28 = vpack.c.bf16 %v245_v24, %v244_v23  ;;  %v4086_v29 = vpack.c.bf16 %v111_v26, %v110_v25  ;;  %v246_v30 = vld [vmem:[#allocation9 + $0x40] sm:$0xff]  ;;  %v247_v31 = vld [vmem:[#allocation9 + $0x48] sm:$0xff]  ;;  %v112_v32 = vld [vmem:[#allocation8 + $0x50] sm:$0xff] }
  0x62   :  { %v113_v33 = vld [vmem:[#allocation8 + $0x58] sm:$0xff]  ;;  %v5147_v34 = vpack.c.bf16 %v247_v31, %v246_v30  ;;  %v248_v36 = vld [vmem:[#allocation9 + $0x50] sm:$0xff]  ;;  %v114_v38 = vld [vmem:[#allocation8 + $0x60] sm:$0xff] }
  0x63   :  { %4077 = vmatpush3.bf16.msra.mxu0 %v4074_v10  ;;  %4107 = vmatpush3.bf16.msra.mxu1 %v5135_v15  ;;  %v4090_v35 = vpack.c.bf16 %v113_v33, %v112_v32  ;;  %v249_v37 = vld [vmem:[#allocation9 + $0x58] sm:$0xff]  ;;  %v115_v39 = vld [vmem:[#allocation8 + $0x68] sm:$0xff]  ;;  %v250_v42 = vld [vmem:[#allocation9 + $0x60] sm:$0xff] }
  0x64   :  { %4079 = vmatprep.subr.bf16.mxu0 %v4078_v16  ;;  %4108 = vmatprep.subr.bf16.mxu1 %v5016_v0  ;;  %v5151_v40 = vpack.c.bf16 %v249_v37, %v248_v36  ;;  %v4094_v41 = vpack.c.bf16 %v115_v39, %v114_v38  ;;  %v251_v43 = vld [vmem:[#allocation9 + $0x68] sm:$0xff]  ;;  %v116_v44 = vld [vmem:[#allocation8 + $0x70] sm:$0xff]  ;;  %v117_v45 = vld [vmem:[#allocation8 + $0x78] sm:$0xff] }
  0x65   :  { %v5155_v46 = vpack.c.bf16 %v251_v43, %v250_v42  ;;  %v4098_v47 = vpack.c.bf16 %v117_v45, %v116_v44  ;;  %v252_v48 = vld [vmem:[#allocation9 + $0x70] sm:$0xff]  ;;  %v253_v49 = vld [vmem:[#allocation9 + $0x78] sm:$0xff]  ;;  %v95_v51 = vld [vmem:[#allocation6 + $0x8] sm:$0xff] }
  0x66   :  { %v5159_v50 = vpack.c.bf16 %v253_v49, %v252_v48  ;;  %v96_v52 = vld [vmem:[#allocation6 + $0x10] sm:$0xff]  ;;  %v97_v53 = vld [vmem:[#allocation6 + $0x18] sm:$0xff]  ;;  %v98_v54 = vld [vmem:[#allocation6 + $0x20] sm:$0xff] }
  0x67   :  { %4081 = vmatpush3.bf16.msra.mxu0 %v4078_v16  ;;  %4110 = vmatpush3.bf16.msra.mxu1 %v5139_v21  ;;  %v99_v55 = vld [vmem:[#allocation6 + $0x28] sm:$0xff]  ;;  %v100_v56 = vld [vmem:[#allocation6 + $0x30] sm:$0xff]  ;;  %v101_v57 = vld [vmem:[#allocation6 + $0x38] sm:$0xff] }
  0x68   :  { %4083 = vmatprep.subr.bf16.mxu0 %v4082_v22  ;;  %4111 = vmatprep.subr.bf16.mxu1 %v5016_v0  ;;  %v5205_v58 = vld [vmem:[%s5779_s4] ss:$0 sm:$0xff]  ;;  %v857_v37 = vld [vmem:[#allocation8 + $0x90] sm:$0xff]  ;;  %v860_v42 = vld [vmem:[#allocation8 + $0xa8] sm:$0xff] }
  0x69   :  { %v858_v38 = vld [vmem:[#allocation8 + $0x98] sm:$0xff]  ;;  %v861_v44 = vld [vmem:[#allocation8 + $0xb0] sm:$0xff]  ;;  %v864_v48 = vld [vmem:[#allocation8 + $0xc8] sm:$0xff] }
  0x6a   :  { %v4298_v39 = vpack.c.bf16 %v858_v38, %v857_v37  ;;  %v862_v45 = vld [vmem:[#allocation8 + $0xb8] sm:$0xff] }
  0x6b   :  { %4085 = vmatpush3.bf16.msra.mxu0 %v4082_v22  ;;  %4113 = vmatpush3.bf16.msra.mxu1 %v5143_v28 }
  0x6c   :  { %4087 = vmatprep.subr.bf16.mxu0 %v4086_v29  ;;  %4114 = vmatprep.subr.bf16.mxu1 %v5016_v0 }
  0x6f   :  { %4089 = vmatpush3.bf16.msra.mxu0 %v4086_v29  ;;  %4116 = vmatpush3.bf16.msra.mxu1 %v5147_v34 }
  0x70   :  { %4091 = vmatprep.subr.bf16.mxu0 %v4090_v35  ;;  %4117 = vmatprep.subr.bf16.mxu1 %v5016_v0 }
  0x73   :  { %4093 = vmatpush3.bf16.msra.mxu0 %v4090_v35  ;;  %4119 = vmatpush3.bf16.msra.mxu1 %v5151_v40 }
  0x74   :  { %4095 = vmatprep.subr.bf16.mxu0 %v4094_v41  ;;  %4120 = vmatprep.subr.bf16.mxu1 %v5016_v0 }
  0x77   :  { %4097 = vmatpush3.bf16.msra.mxu0 %v4094_v41  ;;  %4122 = vmatpush3.bf16.msra.mxu1 %v5155_v46  ;;  %v859_v41 = vld [vmem:[#allocation8 + $0xa0] sm:$0xff] }
  0x78   :  { %4099 = vmatprep.subr.bf16.mxu0 %v4098_v47  ;;  %4123 = vmatprep.subr.bf16.mxu1 %v5016_v0  ;;  %v4302_v43 = vpack.c.bf16 %v860_v42, %v859_v41 }
  0x7b   :  { %4101 = vmatpush3.bf16.msra.mxu0 %v4098_v47  ;;  %4125 = vmatpush3.bf16.msra.mxu1 %v5159_v50  ;;  %v863_v47 = vld [vmem:[#allocation8 + $0xc0] sm:$0xff] }
  0x7c   :  { %4126 = vmatprep.subr.bf16.mxu0 %v5016_v0  ;;  %4150 = vmatprep.subr.bf16.mxu1 %v5016_v0  ;;  %v4310_v49 = vpack.c.bf16 %v864_v48, %v863_v47 }
  0x7e   :  { %3131 = vmatmul.mubr.f32.vlgmr.msra.gmra.mrb[0].mxu0 %v95_v51  ;;  %3175 = vmatmul.mubr.f32.vlgmr.msra.gmra.mrb[0].mxu1 %v5018_v1  ;;  %v866_v51 = vld [vmem:[#allocation8 + $0xd8] sm:$0xff] }
  0x7f   :  { %4128 = vmatpush3.bf16.msra.mxu0 %v5132_v9  ;;  %4152 = vmatpush3.bf16.msra.mxu1 %v5132_v9 }
  0x80   :  { %4129 = vmatprep.subr.bf16.mxu0 %v5016_v0  ;;  %4153 = vmatprep.subr.bf16.mxu1 %v5016_v0 }
  0x81   :  { %3244 = vmatprep.mubr.msk.f32.mxu1 %vm5017_vm0, %v5018_v1  ;;  %3133 = vmatprep.mubr.f32.mxu0 %v96_v52 }
  0x82   :  { %3134 = vmatmul.mubr.f32.gmra.mrb[2].mxu0 %v97_v53  ;;  %v867_v53 = vld [vmem:[#allocation8 + $0xe0] sm:$0xff] }
  0x83   :  { %4131 = vmatpush3.bf16.msra.mxu0 %v5135_v15  ;;  %4155 = vmatpush3.bf16.msra.mxu1 %v5135_v15 }
  0x84   :  { %4132 = vmatprep.subr.bf16.mxu0 %v5016_v0  ;;  %4156 = vmatprep.subr.bf16.mxu1 %v5016_v0 }
  0x85   :  { %3136 = vmatprep.mubr.f32.mxu0 %v98_v54  ;;  %v868_v54 = vld [vmem:[#allocation8 + $0xe8] sm:$0xff] }
  0x86   :  { %3137 = vmatmul.mubr.f32.gmra.mrb[4].mxu0 %v99_v55  ;;  %v4318_v55 = vpack.c.bf16 %v868_v54, %v867_v53 }
  0x87   :  { %4134 = vmatpush3.bf16.msra.mxu0 %v5139_v21  ;;  %4158 = vmatpush3.bf16.msra.mxu1 %v5139_v21 }
  0x88   :  { %4135 = vmatprep.subr.bf16.mxu0 %v5016_v0  ;;  %4159 = vmatprep.subr.bf16.mxu1 %v5016_v0 }
  0x89   :  { %3139 = vmatprep.mubr.f32.mxu0 %v100_v56  ;;  %v869_v56 = vld [vmem:[#allocation8 + $0xf0] sm:$0xff] }
  0x8a   :  { %3140 = vmatmul.mubr.f32.gmra.mrb[6].mxu0 %v101_v57  ;;  %v870_v57 = vld [vmem:[#allocation8 + $0xf8] sm:$0xff] }
  0x8b   :  { %4137 = vmatpush3.bf16.msra.mxu0 %v5143_v28  ;;  %4161 = vmatpush3.bf16.msra.mxu1 %v5143_v28 }
  0x8c   :  { %4138 = vmatprep.subr.bf16.mxu0 %v5016_v0  ;;  %4162 = vmatprep.subr.bf16.mxu1 %v5016_v0 }
  0x8d   :  { %3209 = vmatprep.mubr.msk.f32.mxu0 %vm5017_vm0, %v5018_v1 }
  0x8f   :  { %4140 = vmatpush3.bf16.msra.mxu0 %v5147_v34  ;;  %4164 = vmatpush3.bf16.msra.mxu1 %v5147_v34 }
  0x90   :  { %4141 = vmatprep.subr.bf16.mxu0 %v5016_v0  ;;  %4165 = vmatprep.subr.bf16.mxu1 %v5016_v0 }
  0x93   :  { %4143 = vmatpush3.bf16.msra.mxu0 %v5151_v40  ;;  %4167 = vmatpush3.bf16.msra.mxu1 %v5151_v40 }
  0x94   :  { %4144 = vmatprep.subr.bf16.mxu0 %v5016_v0  ;;  %4168 = vmatprep.subr.bf16.mxu1 %v5016_v0 }
  0x97   :  { %4146 = vmatpush3.bf16.msra.mxu0 %v5155_v46  ;;  %4170 = vmatpush3.bf16.msra.mxu1 %v5155_v46 }
  0x98   :  { %4147 = vmatprep.subr.bf16.mxu0 %v5016_v0  ;;  %4171 = vmatprep.subr.bf16.mxu1 %v5016_v0 }
  0x9b   :  { %4149 = vmatpush3.bf16.msra.mxu0 %v5159_v50  ;;  %4173 = vmatpush3.bf16.msra.mxu1 %v5159_v50 }
  0x9c   :  { %4174 = vmatprep.subr.bf16.mxu0 %v5016_v0  ;;  %4198 = vmatprep.subr.bf16.mxu1 %v5016_v0 }
 0x151   :  { %v3132_v59 = vpop.f32.mrb[0].mxu0  ;;  %v321_v60 = vpop.f32.mrb[0].mxu1 }
 0x152   :  { %v191_v61 = vpop.f32.mrb[1].mxu0  ;;  %v3176_v62 = vpop.f32.mrb[1].mxu1  ;;  %v197_v11 = vadd.f32 %v3132_v59, %v5205_v58  ;;  %v4322_v59 = vpack.c.bf16 %v870_v57, %v869_v56 }
 0x153   :  { %v192_v63 = vadd.f32 %v5205_v58, %v191_v61  ;;  %v994_v61 = vld [vmem:[#allocation9 + $0x88] sm:$0xff] }
 0x155   :  { %v325_v2 = vadd.f32 %v321_v60, %v192_v63  ;;  %v3135_v4 = vpop.f32.mrb[2].mxu0  ;;  %v993_v60 = vld [vmem:[#allocation9 + $0x80] sm:$0xff]  ;;  %v995_v63 = vld [vmem:[#allocation9 + $0x90] sm:$0xff] }
 0x156   :  { %v201_v5 = vpop.f32.mrb[3].mxu0  ;;  %v207_v23 = vadd.f32 %v3135_v4, %v5205_v58  ;;  %v5333_v62 = vpack.c.bf16 %v994_v61, %v993_v60  ;;  %v997_v4 = vld [vmem:[#allocation9 + $0xa0] sm:$0xff] }
 0x157   :  { %4819 = vtanh.f32 %v325_v2  ;;  %v202_v17 = vadd.f32 %v5205_v58, %v201_v5  ;;  %v996_v2 = vld [vmem:[#allocation9 + $0x98] sm:$0xff]  ;;  %v998_v5 = vld [vmem:[#allocation9 + $0xa8] sm:$0xff] }
 0x159   :  { %v5229_v6 = vpop.f32.mrb[4].mxu0 }
 0x15a   :  { %v5231_v7 = vpop.f32.mrb[5].mxu0 }
 0x15b   :  { %v212_v29 = vadd.f32 %v5205_v58, %v5231_v7  ;;  %v999_v7 = vld [vmem:[#allocation9 + $0xb0] sm:$0xff] }
 0x15d   :  { %v5233_v8 = vpop.f32.mrb[6].mxu0 }
 0x15e   :  { %v5235_v10 = vpop.f32.mrb[7].mxu0 }
 0x161   :  { %v5208_v3 = vpop.eup %4819 }
 0x162   :  { %3210 = vmatmul.mubr.f32.vlgmr.msra.gmra.mrb[8].mxu0 %v5208_v3 }
 0x163   :  { %4176 = vmatpush3.bf16.msra.mxu0 %v5132_v9  ;;  %3279 = vmatprep.mubr.msk.f32.mxu0 %vm5017_vm0, %v5018_v1 }
 0x164   :  { %4177 = vmatprep.subr.bf16.mxu0 %v5016_v0 }
 0x167   :  { %4179 = vmatpush3.bf16.msra.mxu0 %v5135_v15 }
 0x168   :  { %4180 = vmatprep.subr.bf16.mxu0 %v5016_v0 }
 0x16b   :  { %4182 = vmatpush3.bf16.msra.mxu0 %v5139_v21 }
 0x16c   :  { %4183 = vmatprep.subr.bf16.mxu0 %v5016_v0 }
 0x16f   :  { %4185 = vmatpush3.bf16.msra.mxu0 %v5143_v28 }
 0x170   :  { %4186 = vmatprep.subr.bf16.mxu0 %v5016_v0 }
 0x173   :  { %4188 = vmatpush3.bf16.msra.mxu0 %v5147_v34 }
 0x174   :  { %4189 = vmatprep.subr.bf16.mxu0 %v5016_v0 }
 0x177   :  { %4191 = vmatpush3.bf16.msra.mxu0 %v5151_v40 }
 0x178   :  { %4192 = vmatprep.subr.bf16.mxu0 %v5016_v0 }
 0x17b   :  { %4194 = vmatpush3.bf16.msra.mxu0 %v5155_v46 }
 0x17c   :  { %4195 = vmatprep.subr.bf16.mxu0 %v5016_v0 }
 0x17f   :  { %4197 = vmatpush3.bf16.msra.mxu0 %v5159_v50 }
 0x180   :  { %4222 = vmatprep.subr.bf16.mxu0 %v5016_v0 }
 0x235   :  { %v395_v12 = vpop.f32.mrb[8].mxu0 }
 0x236   :  { %v399_v13 = vadd.f32 %v395_v12, %v197_v11  ;;  %v3211_v14 = vpop.f32.mrb[9].mxu0  ;;  %v1000_v11 = vld [vmem:[#allocation9 + $0xb8] sm:$0xff] }
 0x237   :  { %v5345_v12 = vpack.c.bf16 %v1000_v11, %v999_v7  ;;  %v1002_v14 = vld [vmem:[#allocation9 + $0xc8] sm:$0xff] }
 0x238   :  { %4821 = vtanh.f32 %v399_v13  ;;  %v1001_v13 = vld [vmem:[#allocation9 + $0xc0] sm:$0xff] }
 0x242   :  { %v5238_v16 = vpop.eup %4821 }
 0x243   :  { %3245 = vmatmul.mubr.f32.vlgmr.msra.gmra.mrb[2].mxu1 %v5238_v16 }
 0x244   :  { %4200 = vmatpush3.bf16.msra.mxu1 %v5132_v9  ;;  %3314 = vmatprep.mubr.msk.f32.mxu1 %vm5017_vm0, %v5018_v1 }
 0x245   :  { %4201 = vmatprep.subr.bf16.mxu1 %v5016_v0 }
 0x248   :  { %4203 = vmatpush3.bf16.msra.mxu1 %v5135_v15 }
 0x249   :  { %4204 = vmatprep.subr.bf16.mxu1 %v5016_v0 }
 0x24c   :  { %4206 = vmatpush3.bf16.msra.mxu1 %v5139_v21 }
 0x24d   :  { %4207 = vmatprep.subr.bf16.mxu1 %v5016_v0 }
 0x250   :  { %4209 = vmatpush3.bf16.msra.mxu1 %v5143_v28 }
 0x251   :  { %4210 = vmatprep.subr.bf16.mxu1 %v5016_v0 }
 0x254   :  { %4212 = vmatpush3.bf16.msra.mxu1 %v5147_v34 }
 0x255   :  { %4213 = vmatprep.subr.bf16.mxu1 %v5016_v0 }
 0x258   :  { %4215 = vmatpush3.bf16.msra.mxu1 %v5151_v40 }
 0x259   :  { %4216 = vmatprep.subr.bf16.mxu1 %v5016_v0 }
 0x25c   :  { %4218 = vmatpush3.bf16.msra.mxu1 %v5155_v46 }
 0x25d   :  { %4219 = vmatprep.subr.bf16.mxu1 %v5016_v0 }
 0x260   :  { %4221 = vmatpush3.bf16.msra.mxu1 %v5159_v50 }
 0x261   :  { %4246 = vmatprep.subr.bf16.mxu1 %v5016_v0 }
 0x316   :  { %v469_v18 = vpop.f32.mrb[2].mxu1 }
 0x317   :  { %v473_v19 = vadd.f32 %v469_v18, %v202_v17  ;;  %v3246_v20 = vpop.f32.mrb[3].mxu1  ;;  %v1003_v17 = vld [vmem:[#allocation9 + $0xd0] sm:$0xff]  ;;  %v1004_v18 = vld [vmem:[#allocation9 + $0xd8] sm:$0xff] }
 0x318   :  { %v1005_v20 = vld [vmem:[#allocation9 + $0xe0] sm:$0xff] }
 0x319   :  { %4823 = vtanh.f32 %v473_v19  ;;  %v5353_v19 = vpack.c.bf16 %v1004_v18, %v1003_v17 }
 0x323   :  { %v5260_v22 = vpop.eup %4823 }
 0x324   :  { %3280 = vmatmul.mubr.f32.vlgmr.msra.gmra.mrb[10].mxu0 %v5260_v22 }
 0x325   :  { %4224 = vmatpush3.bf16.msra.mxu0 %v5132_v9  ;;  %3349 = vmatprep.mubr.msk.f32.mxu0 %vm5017_vm0, %v5018_v1 }
 0x326   :  { %4225 = vmatprep.subr.bf16.mxu0 %v5016_v0 }
 0x329   :  { %4227 = vmatpush3.bf16.msra.mxu0 %v5135_v15 }
 0x32a   :  { %4228 = vmatprep.subr.bf16.mxu0 %v5016_v0 }
 0x32d   :  { %4230 = vmatpush3.bf16.msra.mxu0 %v5139_v21 }
 0x32e   :  { %4231 = vmatprep.subr.bf16.mxu0 %v5016_v0 }
 0x331   :  { %4233 = vmatpush3.bf16.msra.mxu0 %v5143_v28 }
 0x332   :  { %4234 = vmatprep.subr.bf16.mxu0 %v5016_v0 }
 0x335   :  { %4236 = vmatpush3.bf16.msra.mxu0 %v5147_v34 }
 0x336   :  { %4237 = vmatprep.subr.bf16.mxu0 %v5016_v0 }
 0x339   :  { %4239 = vmatpush3.bf16.msra.mxu0 %v5151_v40 }
 0x33a   :  { %4240 = vmatprep.subr.bf16.mxu0 %v5016_v0 }
 0x33d   :  { %4242 = vmatpush3.bf16.msra.mxu0 %v5155_v46 }
 0x33e   :  { %4243 = vmatprep.subr.bf16.mxu0 %v5016_v0 }
 0x341   :  { %4245 = vmatpush3.bf16.msra.mxu0 %v5159_v50 }
 0x342   :  { %4270 = vmatprep.subr.bf16.mxu0 %v5016_v0 }
 0x3f7   :  { %v543_v24 = vpop.f32.mrb[10].mxu0 }
 0x3f8   :  { %v547_v25 = vadd.f32 %v543_v24, %v207_v23  ;;  %v3281_v26 = vpop.f32.mrb[11].mxu0  ;;  %v1007_v24 = vld [vmem:[#allocation9 + $0xf0] sm:$0xff] }
 0x3fa   :  { %4825 = vtanh.f32 %v547_v25  ;;  %v1008_v25 = vld [vmem:[#allocation9 + $0xf8] sm:$0xff] }
 0x3fb   :  { %v5361_v26 = vpack.c.bf16 %v1008_v25, %v1007_v24  ;;  %v1617_v24 = vld [vmem:[#allocation8 + $0x138] sm:$0xff] }
 0x404   :  { %v5282_v27 = vpop.eup %4825 }
 0x405   :  { %3315 = vmatmul.mubr.f32.vlgmr.msra.gmra.mrb[4].mxu1 %v5282_v27 }
 0x406   :  { %4248 = vmatpush3.bf16.msra.mxu1 %v5132_v9  ;;  %3384 = vmatprep.mubr.msk.f32.mxu1 %vm5017_vm0, %v5018_v1 }
 0x407   :  { %4249 = vmatprep.subr.bf16.mxu1 %v5016_v0 }
 0x40a   :  { %4251 = vmatpush3.bf16.msra.mxu1 %v5135_v15 }
 0x40b   :  { %4252 = vmatprep.subr.bf16.mxu1 %v5016_v0 }
 0x40e   :  { %4254 = vmatpush3.bf16.msra.mxu1 %v5139_v21 }
 0x40f   :  { %4255 = vmatprep.subr.bf16.mxu1 %v5016_v0 }
 0x412   :  { %4257 = vmatpush3.bf16.msra.mxu1 %v5143_v28 }
 0x413   :  { %4258 = vmatprep.subr.bf16.mxu1 %v5016_v0 }
 0x416   :  { %4260 = vmatpush3.bf16.msra.mxu1 %v5147_v34 }
 0x417   :  { %4261 = vmatprep.subr.bf16.mxu1 %v5016_v0 }
 0x41a   :  { %4263 = vmatpush3.bf16.msra.mxu1 %v5151_v40 }
 0x41b   :  { %4264 = vmatprep.subr.bf16.mxu1 %v5016_v0 }
 0x41e   :  { %4266 = vmatpush3.bf16.msra.mxu1 %v5155_v46 }
 0x41f   :  { %4267 = vmatprep.subr.bf16.mxu1 %v5016_v0 }
 0x422   :  { %4269 = vmatpush3.bf16.msra.mxu1 %v5159_v50 }
 0x4d8   :  { %v617_v30 = vpop.f32.mrb[4].mxu1 }
 0x4d9   :  { %v621_v31 = vadd.f32 %v617_v30, %v212_v29  ;;  %v3316_v32 = vpop.f32.mrb[5].mxu1 }
 0x4db   :  { %4827 = vtanh.f32 %v621_v31 }
 0x4e5   :  { %v5304_v33 = vpop.eup %4827 }
 0x4e6   :  { %3350 = vmatmul.mubr.f32.vlgmr.msra.gmra.mrb[12].mxu0 %v5304_v33 }
 0x4e7   :  { %4272 = vmatpush3.bf16.msra.mxu0 %v5132_v9  ;;  %3419 = vmatprep.mubr.msk.f32.mxu0 %vm5017_vm0, %v5018_v1  ;;  %v855_v9 = vld [vmem:[#allocation8 + $0x80] sm:$0xff] }
 0x4e8   :  { %4273 = vmatprep.subr.bf16.mxu0 %v5016_v0 }
 0x4eb   :  { %4275 = vmatpush3.bf16.msra.mxu0 %v5135_v15  ;;  %v856_v15 = vld [vmem:[#allocation8 + $0x88] sm:$0xff] }
 0x4ec   :  { %4276 = vmatprep.subr.bf16.mxu0 %v5016_v0 }
 0x4ef   :  { %4278 = vmatpush3.bf16.msra.mxu0 %v5139_v21  ;;  %v4294_v21 = vpack.c.bf16 %v856_v15, %v855_v9 }
 0x4f0   :  { %4279 = vmatprep.subr.bf16.mxu0 %v5016_v0 }
 0x4f1   :  { %4295 = vmatprep.subr.bf16.mxu1 %v4294_v21 }
 0x4f3   :  { %4281 = vmatpush3.bf16.msra.mxu0 %v5143_v28  ;;  %v217_v28 = vadd.f32 %v5229_v6, %v5205_v58  ;;  %v5341_v6 = vpack.c.bf16 %v998_v5, %v997_v4 }
 0x4f4   :  { %4282 = vmatprep.subr.bf16.mxu0 %v5016_v0 }
 0x4f7   :  { %4284 = vmatpush3.bf16.msra.mxu0 %v5147_v34 }
 0x4f8   :  { %4285 = vmatprep.subr.bf16.mxu0 %v5016_v0 }
 0x4fb   :  { %4287 = vmatpush3.bf16.msra.mxu0 %v5151_v40 }
 0x4fc   :  { %4288 = vmatprep.subr.bf16.mxu0 %v5016_v0 }
 0x4ff   :  { %4290 = vmatpush3.bf16.msra.mxu0 %v5155_v46  ;;  %v4306_v46 = vpack.c.bf16 %v862_v45, %v861_v44 }
 0x500   :  { %4291 = vmatprep.subr.bf16.mxu0 %v5016_v0 }
 0x503   :  { %4293 = vmatpush3.bf16.msra.mxu0 %v5159_v50  ;;  %v865_v50 = vld [vmem:[#allocation8 + $0xd0] sm:$0xff] }
 0x504   :  { %4326 = vmatprep.subr.bf16.mxu0 %v5016_v0  ;;  %v4314_v52 = vpack.c.bf16 %v866_v51, %v865_v50 }
 0x5b9   :  { %v691_v34 = vpop.f32.mrb[12].mxu0 }
 0x5ba   :  { %v695_v35 = vadd.f32 %v691_v34, %v217_v28  ;;  %v3351_v36 = vpop.f32.mrb[13].mxu0  ;;  %v227_v34 = vadd.f32 %v5233_v8, %v5205_v58 }
 0x5bc   :  { %4829 = vtanh.f32 %v695_v35 }
 0x5c6   :  { %v4830_v40 = vpop.eup %4829 }
 0x5c7   :  { %3385 = vmatmul.mubr.f32.vlgmr.msra.gmra.mrb[6].mxu1 %v4830_v40 }
 0x5c8   :  { %4297 = vmatpush3.bf16.msra.mxu1 %v4294_v21  ;;  %3454 = vmatprep.mubr.f32.mxu1 %v5208_v3  ;;  %v5337_v3 = vpack.c.bf16 %v996_v2, %v995_v63 }
 0x5c9   :  { %4299 = vmatprep.subr.bf16.mxu1 %v4298_v39 }
 0x5cc   :  { %4301 = vmatpush3.bf16.msra.mxu1 %v4298_v39  ;;  %v5421_v39 = vld [vmem:[%s5779_s4 + $0x1] ss:$0 sm:$0xff] }
 0x5cd   :  { %4303 = vmatprep.subr.bf16.mxu1 %v4302_v43 }
 0x5d0   :  { %4305 = vmatpush3.bf16.msra.mxu1 %v4302_v43 }
 0x5d1   :  { %4307 = vmatprep.subr.bf16.mxu1 %v4306_v46 }
 0x5d4   :  { %4309 = vmatpush3.bf16.msra.mxu1 %v4306_v46 }
 0x5d5   :  { %4311 = vmatprep.subr.bf16.mxu1 %v4310_v49 }
 0x5d8   :  { %4313 = vmatpush3.bf16.msra.mxu1 %v4310_v49 }
 0x5d9   :  { %4315 = vmatprep.subr.bf16.mxu1 %v4314_v52 }
 0x5dc   :  { %4317 = vmatpush3.bf16.msra.mxu1 %v4314_v52 }
 0x5dd   :  { %4319 = vmatprep.subr.bf16.mxu1 %v4318_v55 }
 0x5e0   :  { %4321 = vmatpush3.bf16.msra.mxu1 %v4318_v55 }
 0x5e1   :  { %4323 = vmatprep.subr.bf16.mxu1 %v4322_v59 }
 0x5e4   :  { %4325 = vmatpush3.bf16.msra.mxu1 %v4322_v59 }
 0x5e5   :  { %4350 = vmatprep.subr.bf16.mxu1 %v5016_v0 }
 0x5e7   :  { %3455 = vmatmul.mubr.f32.vlgmr.msra.gmra.mrb[8].mxu1 %v5238_v16  ;;  %v5349_v16 = vpack.c.bf16 %v1002_v14, %v1001_v13  ;;  %v1612_v14 = vld [vmem:[#allocation8 + $0x110] sm:$0xff] }
 0x5e8   :  { %3457 = vmatprep.mubr.f32.mxu1 %v5260_v22  ;;  %4352 = vmatpush3.bf16.msra.mxu1 %v5333_v62  ;;  %v1006_v22 = vld [vmem:[#allocation9 + $0xe8] sm:$0xff] }
 0x5e9   :  { %4353 = vmatprep.subr.bf16.mxu1 %v5016_v0  ;;  %v5357_v23 = vpack.c.bf16 %v1006_v22, %v1005_v20  ;;  %v1615_v20 = vld [vmem:[#allocation8 + $0x128] sm:$0xff] }
 0x5eb   :  { %3458 = vmatmul.mubr.f32.gmra.mrb[10].mxu1 %v5282_v27  ;;  %v222_v27 = vadd.f32 %v5205_v58, %v5235_v10 }
 0x5ec   :  { %3460 = vmatprep.mubr.f32.mxu1 %v5304_v33  ;;  %4355 = vmatpush3.bf16.msra.mxu1 %v5337_v3 }
 0x5ed   :  { %4356 = vmatprep.subr.bf16.mxu1 %v5016_v0 }
 0x5ef   :  { %3461 = vmatmul.mubr.f32.gmra.mrb[12].mxu1 %v4830_v40 }
 0x5f0   :  { %4358 = vmatpush3.bf16.msra.mxu1 %v5341_v6 }
 0x5f1   :  { %4359 = vmatprep.subr.bf16.mxu1 %v5016_v0 }
 0x5f4   :  { %4361 = vmatpush3.bf16.msra.mxu1 %v5345_v12 }
 0x5f5   :  { %4362 = vmatprep.subr.bf16.mxu1 %v5016_v0 }
 0x5f8   :  { %4364 = vmatpush3.bf16.msra.mxu1 %v5349_v16 }
 0x5f9   :  { %4365 = vmatprep.subr.bf16.mxu1 %v5016_v0 }
 0x5fc   :  { %4367 = vmatpush3.bf16.msra.mxu1 %v5353_v19 }
 0x5fd   :  { %4368 = vmatprep.subr.bf16.mxu1 %v5016_v0 }
 0x600   :  { %4370 = vmatpush3.bf16.msra.mxu1 %v5357_v23 }
 0x601   :  { %4371 = vmatprep.subr.bf16.mxu1 %v5016_v0 }
 0x604   :  { %4373 = vmatpush3.bf16.msra.mxu1 %v5361_v26 }
 0x605   :  { %4398 = vmatprep.subr.bf16.mxu1 %v5016_v0 }
 0x69a   :  { %v765_v29 = vpop.f32.mrb[6].mxu1 }
 0x69b   :  { %v769_v30 = vadd.f32 %v765_v29, %v222_v27  ;;  %v3386_v31 = vpop.f32.mrb[7].mxu1  ;;  %v1619_v27 = vld [vmem:[#allocation8 + $0x148] sm:$0xff] }
 0x69c   :  { %v1621_v31 = vld [vmem:[#allocation8 + $0x158] sm:$0xff] }
 0x69d   :  { %4831 = vtanh.f32 %v769_v30  ;;  %v1620_v30 = vld [vmem:[#allocation8 + $0x150] sm:$0xff] }
 0x6a7   :  { %v4832_v32 = vpop.eup %4831 }
 0x6a8   :  { %3420 = vmatmul.mubr.f32.vlgmr.msra.gmra.mrb[14].mxu0 %v4832_v32  ;;  %3463 = vmatprep.mubr.f32.mxu1 %v4832_v32  ;;  %v4538_v32 = vpack.c.bf16 %v1621_v31, %v1620_v30 }
 0x6a9   :  { %4328 = vmatpush3.bf16.msra.mxu0 %v5333_v62  ;;  %3498 = vmatprep.mubr.msk.f32.mxu0 %vm5017_vm0, %v5018_v1 }
 0x6aa   :  { %4329 = vmatprep.subr.bf16.mxu0 %v5016_v0 }
 0x6ad   :  { %4331 = vmatpush3.bf16.msra.mxu0 %v5337_v3 }
 0x6ae   :  { %4332 = vmatprep.subr.bf16.mxu0 %v5016_v0 }
 0x6b1   :  { %4334 = vmatpush3.bf16.msra.mxu0 %v5341_v6 }
 0x6b2   :  { %4335 = vmatprep.subr.bf16.mxu0 %v5016_v0 }
 0x6b5   :  { %4337 = vmatpush3.bf16.msra.mxu0 %v5345_v12 }
 0x6b6   :  { %4338 = vmatprep.subr.bf16.mxu0 %v5016_v0 }
 0x6b9   :  { %4340 = vmatpush3.bf16.msra.mxu0 %v5349_v16 }
 0x6ba   :  { %v5378_v10 = vpop.f32.mrb[8].mxu1  ;;  %4341 = vmatprep.subr.bf16.mxu0 %v5016_v0 }
 0x6bb   :  { %v945_v33 = vpop.f32.mrb[9].mxu1  ;;  %v951_v45 = vadd.f32 %v5378_v10, %v5421_v39  ;;  %v1622_v10 = vld [vmem:[#allocation8 + $0x160] sm:$0xff] }
 0x6bc   :  { %v946_v40 = vadd.f32 %v5421_v39, %v945_v33  ;;  %v1623_v33 = vld [vmem:[#allocation8 + $0x168] sm:$0xff] }
 0x6bd   :  { %4343 = vmatpush3.bf16.msra.mxu0 %v5353_v19 }
 0x6be   :  { %v5382_v9 = vpop.f32.mrb[10].mxu1  ;;  %4344 = vmatprep.subr.bf16.mxu0 %v5016_v0 }
 0x6bf   :  { %v5385_v15 = vpop.f32.mrb[11].mxu1  ;;  %v961_v55 = vadd.f32 %v5382_v9, %v5421_v39  ;;  %v4542_v9 = vpack.c.bf16 %v1623_v33, %v1622_v10 }
 0x6c0   :  { %v956_v50 = vadd.f32 %v5421_v39, %v5385_v15  ;;  %v1624_v15 = vld [vmem:[#allocation8 + $0x170] sm:$0xff] }
 0x6c1   :  { %4346 = vmatpush3.bf16.msra.mxu0 %v5357_v23 }
 0x6c2   :  { %v5388_v21 = vpop.f32.mrb[12].mxu1  ;;  %4347 = vmatprep.subr.bf16.mxu0 %v5016_v0 }
 0x6c3   :  { %v5391_v28 = vpop.f32.mrb[13].mxu1  ;;  %v971_v7 = vadd.f32 %v5388_v21, %v5421_v39  ;;  %v1625_v21 = vld [vmem:[#allocation8 + $0x178] sm:$0xff] }
 0x6c4   :  { %v966_v61 = vadd.f32 %v5421_v39, %v5391_v28  ;;  %v4546_v28 = vpack.c.bf16 %v1625_v21, %v1624_v15 }
 0x6c5   :  { %4349 = vmatpush3.bf16.msra.mxu0 %v5361_v26 }
 0x6c6   :  { %4374 = vmatprep.subr.bf16.mxu0 %v5016_v0 }
 0x6c8   :  { %3499 = vmatmul.mubr.f32.vlgmr.msra.gmra.mrb[16].mxu0 %v5018_v1 }
 0x6c9   :  { %4376 = vmatpush3.bf16.msra.mxu0 %v5333_v62  ;;  %3568 = vmatprep.mubr.msk.f32.mxu0 %vm5017_vm0, %v5018_v1 }
 0x6ca   :  { %4377 = vmatprep.subr.bf16.mxu0 %v5016_v0 }
 0x6cd   :  { %4379 = vmatpush3.bf16.msra.mxu0 %v5337_v3 }
 0x6ce   :  { %4380 = vmatprep.subr.bf16.mxu0 %v5016_v0 }
 0x6d1   :  { %4382 = vmatpush3.bf16.msra.mxu0 %v5341_v6 }
 0x6d2   :  { %4383 = vmatprep.subr.bf16.mxu0 %v5016_v0 }
 0x6d5   :  { %4385 = vmatpush3.bf16.msra.mxu0 %v5345_v12 }
 0x6d6   :  { %4386 = vmatprep.subr.bf16.mxu0 %v5016_v0 }
 0x6d9   :  { %4388 = vmatpush3.bf16.msra.mxu0 %v5349_v16 }
 0x6da   :  { %4389 = vmatprep.subr.bf16.mxu0 %v5016_v0 }
 0x6dd   :  { %4391 = vmatpush3.bf16.msra.mxu0 %v5353_v19 }
 0x6de   :  { %4392 = vmatprep.subr.bf16.mxu0 %v5016_v0 }
 0x6e1   :  { %4394 = vmatpush3.bf16.msra.mxu0 %v5357_v23 }
 0x6e2   :  { %4395 = vmatprep.subr.bf16.mxu0 %v5016_v0 }
 0x6e5   :  { %4397 = vmatpush3.bf16.msra.mxu0 %v5361_v26 }
 0x6e6   :  { %4422 = vmatprep.subr.bf16.mxu0 %v5016_v0 }
 0x77b   :  { %v839_v35 = vpop.f32.mrb[14].mxu0 }
 0x77c   :  { %v843_v36 = vadd.f32 %v839_v35, %v227_v34  ;;  %v3421_v37 = vpop.f32.mrb[15].mxu0  ;;  %v1748_v34 = vld [vmem:[#allocation9 + $0x100] sm:$0xff]  ;;  %v1749_v35 = vld [vmem:[#allocation9 + $0x108] sm:$0xff] }
 0x77d   :  { %v1750_v37 = vld [vmem:[#allocation9 + $0x110] sm:$0xff] }
 0x77e   :  { %4833 = vtanh.f32 %v843_v36  ;;  %v5548_v36 = vpack.c.bf16 %v1749_v35, %v1748_v34 }
 0x788   :  { %v4834_v38 = vpop.eup %4833 }
 0x789   :  { %3464 = vmatmul.mubr.f32.gmra.mrb[14].mxu1 %v4834_v38  ;;  %v1751_v38 = vld [vmem:[#allocation9 + $0x118] sm:$0xff] }
 0x78a   :  { %3533 = vmatprep.mubr.msk.f32.mxu1 %vm5017_vm0, %v5018_v1 }
 0x79b   :  { %v1076_v41 = vpop.f32.mrb[16].mxu0 }
 0x79c   :  { %v1080_v42 = vadd.f32 %v1076_v41, %v946_v40  ;;  %v3500_v43 = vpop.f32.mrb[17].mxu0  ;;  %v5552_v40 = vpack.c.bf16 %v1751_v38, %v1750_v37  ;;  %v1752_v41 = vld [vmem:[#allocation9 + $0x120] sm:$0xff] }
 0x79e   :  { %4835 = vtanh.f32 %v1080_v42  ;;  %v1753_v42 = vld [vmem:[#allocation9 + $0x128] sm:$0xff] }
 0x79f   :  { %v5556_v43 = vpack.c.bf16 %v1753_v42, %v1752_v41 }
 0x7a8   :  { %v5424_v58 = vpop.eup %4835 }
 0x7a9   :  { %3534 = vmatmul.mubr.f32.vlgmr.msra.gmra.mrb[16].mxu1 %v5424_v58 }
 0x7aa   :  { %4400 = vmatpush3.bf16.msra.mxu1 %v5333_v62  ;;  %3603 = vmatprep.mubr.msk.f32.mxu1 %vm5017_vm0, %v5018_v1 }
 0x7ab   :  { %4401 = vmatprep.subr.bf16.mxu1 %v5016_v0 }
 0x7ae   :  { %4403 = vmatpush3.bf16.msra.mxu1 %v5337_v3 }
 0x7af   :  { %4404 = vmatprep.subr.bf16.mxu1 %v5016_v0 }
 0x7b2   :  { %4406 = vmatpush3.bf16.msra.mxu1 %v5341_v6 }
 0x7b3   :  { %4407 = vmatprep.subr.bf16.mxu1 %v5016_v0 }
 0x7b6   :  { %4409 = vmatpush3.bf16.msra.mxu1 %v5345_v12 }
 0x7b7   :  { %4410 = vmatprep.subr.bf16.mxu1 %v5016_v0 }
 0x7ba   :  { %4412 = vmatpush3.bf16.msra.mxu1 %v5349_v16 }
 0x7bb   :  { %4413 = vmatprep.subr.bf16.mxu1 %v5016_v0 }
 0x7be   :  { %4415 = vmatpush3.bf16.msra.mxu1 %v5353_v19 }
 0x7bf   :  { %4416 = vmatprep.subr.bf16.mxu1 %v5016_v0 }
 0x7c2   :  { %4418 = vmatpush3.bf16.msra.mxu1 %v5357_v23 }
 0x7c3   :  { %4419 = vmatprep.subr.bf16.mxu1 %v5016_v0 }
 0x7c6   :  { %4421 = vmatpush3.bf16.msra.mxu1 %v5361_v26 }
 0x7c7   :  { %4446 = vmatprep.subr.bf16.mxu1 %v5016_v0 }
 0x85c   :  { %v5445_v8 = vpop.f32.mrb[14].mxu1 }
 0x85d   :  { %v5447_v44 = vpop.f32.mrb[15].mxu1 }
 0x87c   :  { %v1150_v46 = vpop.f32.mrb[16].mxu1 }
 0x87d   :  { %v1154_v47 = vadd.f32 %v1150_v46, %v951_v45  ;;  %v3535_v48 = vpop.f32.mrb[17].mxu1  ;;  %v1755_v45 = vld [vmem:[#allocation9 + $0x138] sm:$0xff] }
 0x87e   :  { %v1757_v48 = vld [vmem:[#allocation9 + $0x148] sm:$0xff] }
 0x87f   :  { %4837 = vtanh.f32 %v1154_v47  ;;  %v1756_v47 = vld [vmem:[#allocation9 + $0x140] sm:$0xff] }
 0x889   :  { %v5451_v49 = vpop.eup %4837 }
 0x88a   :  { %3569 = vmatmul.mubr.f32.vlgmr.msra.gmra.mrb[18].mxu0 %v5451_v49 }
 0x88b   :  { %4424 = vmatpush3.bf16.msra.mxu0 %v5333_v62  ;;  %3638 = vmatprep.mubr.msk.f32.mxu0 %vm5017_vm0, %v5018_v1 }
 0x88c   :  { %4425 = vmatprep.subr.bf16.mxu0 %v5016_v0 }
 0x88f   :  { %4427 = vmatpush3.bf16.msra.mxu0 %v5337_v3 }
 0x890   :  { %4428 = vmatprep.subr.bf16.mxu0 %v5016_v0 }
 0x893   :  { %4430 = vmatpush3.bf16.msra.mxu0 %v5341_v6 }
 0x894   :  { %4431 = vmatprep.subr.bf16.mxu0 %v5016_v0 }
 0x897   :  { %4433 = vmatpush3.bf16.msra.mxu0 %v5345_v12 }
 0x898   :  { %4434 = vmatprep.subr.bf16.mxu0 %v5016_v0 }
 0x89b   :  { %4436 = vmatpush3.bf16.msra.mxu0 %v5349_v16 }
 0x89c   :  { %4437 = vmatprep.subr.bf16.mxu0 %v5016_v0 }
 0x89f   :  { %4439 = vmatpush3.bf16.msra.mxu0 %v5353_v19 }
 0x8a0   :  { %4440 = vmatprep.subr.bf16.mxu0 %v5016_v0 }
 0x8a3   :  { %4442 = vmatpush3.bf16.msra.mxu0 %v5357_v23 }
 0x8a4   :  { %4443 = vmatprep.subr.bf16.mxu0 %v5016_v0 }
 0x8a7   :  { %4445 = vmatpush3.bf16.msra.mxu0 %v5361_v26 }
 0x8a8   :  { %4470 = vmatprep.subr.bf16.mxu0 %v5016_v0 }
 0x95d   :  { %v1224_v51 = vpop.f32.mrb[18].mxu0 }
 0x95e   :  { %v1228_v52 = vadd.f32 %v1224_v51, %v956_v50  ;;  %v3570_v53 = vpop.f32.mrb[19].mxu0  ;;  %v1758_v50 = vld [vmem:[#allocation9 + $0x150] sm:$0xff]  ;;  %v1759_v51 = vld [vmem:[#allocation9 + $0x158] sm:$0xff] }
 0x95f   :  { %v1760_v53 = vld [vmem:[#allocation9 + $0x160] sm:$0xff] }
 0x960   :  { %4839 = vtanh.f32 %v1228_v52  ;;  %v5568_v52 = vpack.c.bf16 %v1759_v51, %v1758_v50 }
 0x96a   :  { %v5474_v54 = vpop.eup %4839 }
 0x96b   :  { %3604 = vmatmul.mubr.f32.vlgmr.msra.gmra.mrb[18].mxu1 %v5474_v54 }
 0x96c   :  { %4448 = vmatpush3.bf16.msra.mxu1 %v5333_v62  ;;  %3673 = vmatprep.mubr.msk.f32.mxu1 %vm5017_vm0, %v5018_v1 }
 0x96d   :  { %4449 = vmatprep.subr.bf16.mxu1 %v5016_v0 }
 0x970   :  { %4451 = vmatpush3.bf16.msra.mxu1 %v5337_v3 }
 0x971   :  { %4452 = vmatprep.subr.bf16.mxu1 %v5016_v0 }
 0x974   :  { %4454 = vmatpush3.bf16.msra.mxu1 %v5341_v6 }
 0x975   :  { %4455 = vmatprep.subr.bf16.mxu1 %v5016_v0 }
 0x978   :  { %4457 = vmatpush3.bf16.msra.mxu1 %v5345_v12 }
 0x979   :  { %4458 = vmatprep.subr.bf16.mxu1 %v5016_v0 }
 0x97c   :  { %4460 = vmatpush3.bf16.msra.mxu1 %v5349_v16 }
 0x97d   :  { %4461 = vmatprep.subr.bf16.mxu1 %v5016_v0 }
 0x980   :  { %4463 = vmatpush3.bf16.msra.mxu1 %v5353_v19 }
 0x981   :  { %4464 = vmatprep.subr.bf16.mxu1 %v5016_v0 }
 0x984   :  { %4466 = vmatpush3.bf16.msra.mxu1 %v5357_v23 }
 0x985   :  { %4467 = vmatprep.subr.bf16.mxu1 %v5016_v0 }
 0x988   :  { %4469 = vmatpush3.bf16.msra.mxu1 %v5361_v26 }
 0x989   :  { %4494 = vmatprep.subr.bf16.mxu1 %v5016_v0 }
 0xa3e   :  { %v1298_v56 = vpop.f32.mrb[18].mxu1 }
 0xa3f   :  { %v1302_v57 = vadd.f32 %v1298_v56, %v961_v55  ;;  %v3605_v59 = vpop.f32.mrb[19].mxu1  ;;  %v1762_v56 = vld [vmem:[#allocation9 + $0x170] sm:$0xff] }
 0xa41   :  { %4841 = vtanh.f32 %v1302_v57  ;;  %v1763_v57 = vld [vmem:[#allocation9 + $0x178] sm:$0xff] }
 0xa42   :  { %v5576_v59 = vpack.c.bf16 %v1763_v57, %v1762_v56  ;;  %v2371_v56 = vld [vmem:[#allocation11 + $0x38] sm:$0xff]  ;;  %v2364_v57 = vld [vmem:[#allocation11] sm:$0xff] }
 0xa4b   :  { %v5497_v60 = vpop.eup %4841 }
 0xa4c   :  { %3639 = vmatmul.mubr.f32.vlgmr.msra.gmra.mrb[20].mxu0 %v5497_v60 }
 0xa4d   :  { %4472 = vmatpush3.bf16.msra.mxu0 %v5333_v62  ;;  %3708 = vmatprep.mubr.msk.f32.mxu0 %vm5017_vm0, %v5018_v1 }
 0xa4e   :  { %4473 = vmatprep.subr.bf16.mxu0 %v5016_v0 }
 0xa51   :  { %4475 = vmatpush3.bf16.msra.mxu0 %v5337_v3 }
 0xa52   :  { %4476 = vmatprep.subr.bf16.mxu0 %v5016_v0 }
 0xa55   :  { %4478 = vmatpush3.bf16.msra.mxu0 %v5341_v6 }
 0xa56   :  { %4479 = vmatprep.subr.bf16.mxu0 %v5016_v0 }
 0xa59   :  { %4481 = vmatpush3.bf16.msra.mxu0 %v5345_v12 }
 0xa5a   :  { %4482 = vmatprep.subr.bf16.mxu0 %v5016_v0 }
 0xa5d   :  { %4484 = vmatpush3.bf16.msra.mxu0 %v5349_v16 }
 0xa5e   :  { %4485 = vmatprep.subr.bf16.mxu0 %v5016_v0 }
 0xa61   :  { %4487 = vmatpush3.bf16.msra.mxu0 %v5353_v19 }
 0xa62   :  { %4488 = vmatprep.subr.bf16.mxu0 %v5016_v0 }
 0xa65   :  { %4490 = vmatpush3.bf16.msra.mxu0 %v5357_v23 }
 0xa66   :  { %4491 = vmatprep.subr.bf16.mxu0 %v5016_v0 }
 0xa69   :  { %4493 = vmatpush3.bf16.msra.mxu0 %v5361_v26 }
 0xb1f   :  { %v1372_v63 = vpop.f32.mrb[20].mxu0 }
 0xb20   :  { %v1376_v2 = vadd.f32 %v1372_v63, %v966_v61  ;;  %v3640_v4 = vpop.f32.mrb[21].mxu0 }
 0xb22   :  { %4843 = vtanh.f32 %v1376_v2 }
 0xb2c   :  { %v5519_v5 = vpop.eup %4843 }
 0xb2d   :  { %3674 = vmatmul.mubr.f32.vlgmr.msra.gmra.mrb[20].mxu1 %v5519_v5 }
 0xb2e   :  { %4496 = vmatpush3.bf16.msra.mxu1 %v5333_v62  ;;  %3743 = vmatprep.mubr.msk.f32.mxu1 %vm5017_vm0, %v5018_v1  ;;  %v1610_v62 = vld [vmem:[#allocation8 + $0x100] sm:$0xff] }
 0xb2f   :  { %4497 = vmatprep.subr.bf16.mxu1 %v5016_v0 }
 0xb32   :  { %4499 = vmatpush3.bf16.msra.mxu1 %v5337_v3  ;;  %v1611_v3 = vld [vmem:[#allocation8 + $0x108] sm:$0xff] }
 0xb33   :  { %4500 = vmatprep.subr.bf16.mxu1 %v5016_v0 }
 0xb36   :  { %4502 = vmatpush3.bf16.msra.mxu1 %v5341_v6  ;;  %v4518_v6 = vpack.c.bf16 %v1611_v3, %v1610_v62 }
 0xb37   :  { %4503 = vmatprep.subr.bf16.mxu1 %v5016_v0 }
 0xb38   :  { %4519 = vmatprep.subr.bf16.mxu0 %v4518_v6 }
 0xb3a   :  { %4505 = vmatpush3.bf16.msra.mxu1 %v5345_v12 }
 0xb3b   :  { %4506 = vmatprep.subr.bf16.mxu1 %v5016_v0 }
 0xb3e   :  { %4508 = vmatpush3.bf16.msra.mxu1 %v5349_v16  ;;  %v1613_v16 = vld [vmem:[#allocation8 + $0x118] sm:$0xff] }
 0xb3f   :  { %4509 = vmatprep.subr.bf16.mxu1 %v5016_v0  ;;  %v4522_v17 = vpack.c.bf16 %v1613_v16, %v1612_v14 }
 0xb42   :  { %4511 = vmatpush3.bf16.msra.mxu1 %v5353_v19  ;;  %v1614_v19 = vld [vmem:[#allocation8 + $0x120] sm:$0xff] }
 0xb43   :  { %4512 = vmatprep.subr.bf16.mxu1 %v5016_v0  ;;  %v4526_v22 = vpack.c.bf16 %v1615_v20, %v1614_v19 }
 0xb46   :  { %4514 = vmatpush3.bf16.msra.mxu1 %v5357_v23  ;;  %v1616_v23 = vld [vmem:[#allocation8 + $0x130] sm:$0xff] }
 0xb47   :  { %4515 = vmatprep.subr.bf16.mxu1 %v5016_v0  ;;  %v4530_v25 = vpack.c.bf16 %v1617_v24, %v1616_v23 }
 0xb4a   :  { %4517 = vmatpush3.bf16.msra.mxu1 %v5361_v26  ;;  %v1618_v26 = vld [vmem:[#allocation8 + $0x140] sm:$0xff] }
 0xb4b   :  { %4550 = vmatprep.subr.bf16.mxu1 %v5016_v0  ;;  %v4534_v29 = vpack.c.bf16 %v1619_v27, %v1618_v26 }
 0xc00   :  { %v1446_v11 = vpop.f32.mrb[20].mxu1 }
 0xc01   :  { %v1450_v12 = vadd.f32 %v1446_v11, %v971_v7  ;;  %v3675_v13 = vpop.f32.mrb[21].mxu1  ;;  %v981_v11 = vadd.f32 %v5445_v8, %v5421_v39 }
 0xc03   :  { %4845 = vtanh.f32 %v1450_v12 }
 0xc0d   :  { %v4846_v18 = vpop.eup %4845 }
 0xc0e   :  { %3709 = vmatmul.mubr.f32.vlgmr.msra.gmra.mrb[22].mxu0 %v4846_v18 }
 0xc0f   :  { %4521 = vmatpush3.bf16.msra.mxu0 %v4518_v6  ;;  %3778 = vmatprep.mubr.f32.mxu0 %v5424_v58  ;;  %v1754_v58 = vld [vmem:[#allocation9 + $0x130] sm:$0xff] }
 0xc10   :  { %4523 = vmatprep.subr.bf16.mxu0 %v4522_v17  ;;  %v5560_v46 = vpack.c.bf16 %v1755_v45, %v1754_v58 }
 0xc13   :  { %4525 = vmatpush3.bf16.msra.mxu0 %v4522_v17  ;;  %v5636_v17 = vld [vmem:[%s5779_s4 + $0x2] ss:$0 sm:$0xff] }
 0xc14   :  { %4527 = vmatprep.subr.bf16.mxu0 %v4526_v22 }
 0xc17   :  { %4529 = vmatpush3.bf16.msra.mxu0 %v4526_v22 }
 0xc18   :  { %4531 = vmatprep.subr.bf16.mxu0 %v4530_v25 }
 0xc1b   :  { %4533 = vmatpush3.bf16.msra.mxu0 %v4530_v25 }
 0xc1c   :  { %4535 = vmatprep.subr.bf16.mxu0 %v4534_v29 }
 0xc1f   :  { %4537 = vmatpush3.bf16.msra.mxu0 %v4534_v29  ;;  %v5663_v29 = vld [vmem:[#allocation3] sm:$0xff] }
 0xc20   :  { %4539 = vmatprep.subr.bf16.mxu0 %v4538_v32  ;;  %vm1837_vm1 = vcmp.eq.s32.totalorder %v5663_v29, 1  ;;  %vm1912_vm2 = vcmp.eq.s32.totalorder %v5663_v29, 2  ;;  %vm1987_vm3 = vcmp.eq.s32.totalorder %v5663_v29, 3  ;;  %vm2062_vm4 = vcmp.eq.s32.totalorder %v5663_v29, 4 }
 0xc21   :  { %vm2137_vm5 = vcmp.eq.s32.totalorder %v5663_v29, 5  ;;  %vm2212_vm6 = vcmp.eq.s32.totalorder %v5663_v29, 6  ;;  %vm2287_vm7 = vcmp.eq.s32.totalorder %v5663_v29, 7  ;;  %vm2362_vm8 = vcmp.eq.s32.totalorder %v5663_v29, 8 }
 0xc23   :  { %4541 = vmatpush3.bf16.msra.mxu0 %v4538_v32 }
 0xc24   :  { %4543 = vmatprep.subr.bf16.mxu0 %v4542_v9 }
 0xc27   :  { %4545 = vmatpush3.bf16.msra.mxu0 %v4542_v9 }
 0xc28   :  { %4547 = vmatprep.subr.bf16.mxu0 %v4546_v28 }
 0xc2b   :  { %4549 = vmatpush3.bf16.msra.mxu0 %v4546_v28 }
 0xc2c   :  { %4574 = vmatprep.subr.bf16.mxu0 %v5016_v0 }
 0xc2e   :  { %3779 = vmatmul.mubr.f32.vlgmr.msra.gmra.mrb[24].mxu0 %v5451_v49  ;;  %v5564_v49 = vpack.c.bf16 %v1757_v48, %v1756_v47 }
 0xc2f   :  { %3781 = vmatprep.mubr.f32.mxu0 %v5474_v54  ;;  %4576 = vmatpush3.bf16.msra.mxu0 %v5548_v36  ;;  %v1761_v54 = vld [vmem:[#allocation9 + $0x168] sm:$0xff] }
 0xc30   :  { %4577 = vmatprep.subr.bf16.mxu0 %v5016_v0  ;;  %v5572_v55 = vpack.c.bf16 %v1761_v54, %v1760_v53  ;;  %v2365_v53 = vld [vmem:[#allocation11 + $0x8] sm:$0xff] }
 0xc31   :  { %v2369_v54 = vld [vmem:[#allocation11 + $0x28] sm:$0xff] }
 0xc32   :  { %3782 = vmatmul.mubr.f32.gmra.mrb[26].mxu0 %v5497_v60  ;;  %v976_v60 = vadd.f32 %v5421_v39, %v5447_v44 }
 0xc33   :  { %3784 = vmatprep.mubr.f32.mxu0 %v5519_v5  ;;  %4579 = vmatpush3.bf16.msra.mxu0 %v5552_v40 }
 0xc34   :  { %4580 = vmatprep.subr.bf16.mxu0 %v5016_v0 }
 0xc36   :  { %3785 = vmatmul.mubr.f32.gmra.mrb[28].mxu0 %v4846_v18 }
 0xc37   :  { %4582 = vmatpush3.bf16.msra.mxu0 %v5556_v43 }
 0xc38   :  { %4583 = vmatprep.subr.bf16.mxu0 %v5016_v0 }
 0xc3b   :  { %4585 = vmatpush3.bf16.msra.mxu0 %v5560_v46 }
 0xc3c   :  { %4586 = vmatprep.subr.bf16.mxu0 %v5016_v0 }
 0xc3f   :  { %4588 = vmatpush3.bf16.msra.mxu0 %v5564_v49 }
 0xc40   :  { %4589 = vmatprep.subr.bf16.mxu0 %v5016_v0 }
 0xc43   :  { %4591 = vmatpush3.bf16.msra.mxu0 %v5568_v52 }
 0xc44   :  { %4592 = vmatprep.subr.bf16.mxu0 %v5016_v0 }
 0xc47   :  { %4594 = vmatpush3.bf16.msra.mxu0 %v5572_v55 }
 0xc48   :  { %4595 = vmatprep.subr.bf16.mxu0 %v5016_v0 }
 0xc4b   :  { %4597 = vmatpush3.bf16.msra.mxu0 %v5576_v59 }
 0xc4c   :  { %4622 = vmatprep.subr.bf16.mxu0 %v5016_v0 }
 0xce1   :  { %v1520_v61 = vpop.f32.mrb[22].mxu0 }
 0xce2   :  { %v1524_v63 = vadd.f32 %v1520_v61, %v976_v60  ;;  %v3710_v2 = vpop.f32.mrb[23].mxu0 }
 0xce3   :  { %v2377_v2 = vld [vmem:[#allocation11 + $0x68] sm:$0xff] }
 0xce4   :  { %4847 = vtanh.f32 %v1524_v63  ;;  %v2373_v63 = vld [vmem:[#allocation11 + $0x48] sm:$0xff] }
 0xcee   :  { %v4848_v4 = vpop.eup %4847 }
 0xcef   :  { %3744 = vmatmul.mubr.f32.vlgmr.msra.gmra.mrb[22].mxu1 %v4848_v4  ;;  %3787 = vmatprep.mubr.f32.mxu0 %v4848_v4  ;;  %v4746_v4 = vpack.c.bf16 %v2377_v2, %v2373_v63  ;;  %v2411_v63 = vld [vmem:[#allocation11 + $0x178] sm:$0xff]  ;;  %v2404_v2 = vld [vmem:[#allocation11 + $0x140] sm:$0xff] }
 0xcf0   :  { %4552 = vmatpush3.bf16.msra.mxu1 %v5548_v36  ;;  %3822 = vmatprep.mubr.msk.f32.mxu1 %vm5017_vm0, %v5018_v1 }
 0xcf1   :  { %4553 = vmatprep.subr.bf16.mxu1 %v5016_v0 }
 0xcf4   :  { %4555 = vmatpush3.bf16.msra.mxu1 %v5552_v40 }
 0xcf5   :  { %4556 = vmatprep.subr.bf16.mxu1 %v5016_v0 }
 0xcf8   :  { %4558 = vmatpush3.bf16.msra.mxu1 %v5556_v43 }
 0xcf9   :  { %4559 = vmatprep.subr.bf16.mxu1 %v5016_v0 }
 0xcfc   :  { %4561 = vmatpush3.bf16.msra.mxu1 %v5560_v46 }
 0xcfd   :  { %4562 = vmatprep.subr.bf16.mxu1 %v5016_v0 }
 0xd00   :  { %4564 = vmatpush3.bf16.msra.mxu1 %v5564_v49 }
 0xd01   :  { %v5593_v44 = vpop.f32.mrb[24].mxu0  ;;  %4565 = vmatprep.subr.bf16.mxu1 %v5016_v0 }
 0xd02   :  { %v1700_v5 = vpop.f32.mrb[25].mxu0  ;;  %v1706_v24 = vadd.f32 %v5593_v44, %v5636_v17  ;;  %v2372_v44 = vld [vmem:[#allocation11 + $0x40] sm:$0xff] }
 0xd03   :  { %v1701_v18 = vadd.f32 %v5636_v17, %v1700_v5  ;;  %v2376_v5 = vld [vmem:[#allocation11 + $0x60] sm:$0xff] }
 0xd04   :  { %4567 = vmatpush3.bf16.msra.mxu1 %v5568_v52 }
 0xd05   :  { %v5597_v62 = vpop.f32.mrb[26].mxu0  ;;  %4568 = vmatprep.subr.bf16.mxu1 %v5016_v0 }
 0xd06   :  { %v5600_v3 = vpop.f32.mrb[27].mxu0  ;;  %v1716_v34 = vadd.f32 %v5597_v62, %v5636_v17  ;;  %v4748_v62 = vpack.c.bf16 %v2376_v5, %v2372_v44 }
 0xd07   :  { %v1711_v10 = vadd.f32 %v5636_v17, %v5600_v3  ;;  %v2381_v3 = vld [vmem:[#allocation11 + $0x88] sm:$0xff] }
 0xd08   :  { %4570 = vmatpush3.bf16.msra.mxu1 %v5572_v55 }
 0xd09   :  { %v5603_v6 = vpop.f32.mrb[28].mxu0  ;;  %4571 = vmatprep.subr.bf16.mxu1 %v5016_v0 }
 0xd0a   :  { %v5606_v7 = vpop.f32.mrb[29].mxu0 }
 0xd0b   :  { %v1721_v58 = vadd.f32 %v5636_v17, %v5606_v7 }
 0xd0c   :  { %4573 = vmatpush3.bf16.msra.mxu1 %v5576_v59 }
 0xd0d   :  { %4598 = vmatprep.subr.bf16.mxu1 %v5016_v0 }
 0xd0f   :  { %3823 = vmatmul.mubr.f32.vlgmr.msra.gmra.mrb[24].mxu1 %v5018_v1 }
 0xd10   :  { %4600 = vmatpush3.bf16.msra.mxu1 %v5548_v36  ;;  %3892 = vmatprep.mubr.msk.f32.mxu1 %vm5017_vm0, %v5018_v1 }
 0xd11   :  { %4601 = vmatprep.subr.bf16.mxu1 %v5016_v0 }
 0xd14   :  { %4603 = vmatpush3.bf16.msra.mxu1 %v5552_v40 }
 0xd15   :  { %4604 = vmatprep.subr.bf16.mxu1 %v5016_v0 }
 0xd18   :  { %4606 = vmatpush3.bf16.msra.mxu1 %v5556_v43 }
 0xd19   :  { %4607 = vmatprep.subr.bf16.mxu1 %v5016_v0 }
 0xd1c   :  { %4609 = vmatpush3.bf16.msra.mxu1 %v5560_v46 }
 0xd1d   :  { %4610 = vmatprep.subr.bf16.mxu1 %v5016_v0 }
 0xd20   :  { %4612 = vmatpush3.bf16.msra.mxu1 %v5564_v49 }
 0xd21   :  { %4613 = vmatprep.subr.bf16.mxu1 %v5016_v0 }
 0xd24   :  { %4615 = vmatpush3.bf16.msra.mxu1 %v5568_v52 }
 0xd25   :  { %4616 = vmatprep.subr.bf16.mxu1 %v5016_v0 }
 0xd28   :  { %4618 = vmatpush3.bf16.msra.mxu1 %v5572_v55 }
 0xd29   :  { %4619 = vmatprep.subr.bf16.mxu1 %v5016_v0 }
 0xd2c   :  { %4621 = vmatpush3.bf16.msra.mxu1 %v5576_v59 }
 0xd2d   :  { %4646 = vmatprep.subr.bf16.mxu1 %v5016_v0 }
 0xdc2   :  { %v1594_v12 = vpop.f32.mrb[22].mxu1 }
 0xdc3   :  { %v1598_v13 = vadd.f32 %v1594_v12, %v981_v11  ;;  %v3745_v14 = vpop.f32.mrb[23].mxu1  ;;  %v2380_v11 = vld [vmem:[#allocation11 + $0x80] sm:$0xff] }
 0xdc4   :  { %v2384_v12 = vld [vmem:[#allocation11 + $0xa0] sm:$0xff]  ;;  %v2389_v14 = vld [vmem:[#allocation11 + $0xc8] sm:$0xff] }
 0xdc5   :  { %4849 = vtanh.f32 %v1598_v13  ;;  %v4752_v13 = vpack.c.bf16 %v2384_v12, %v2380_v11  ;;  %v2417_v11 = vld [vmem:[#allocation11 + $0x1a8] sm:$0xff]  ;;  %v2415_v12 = vld [vmem:[#allocation11 + $0x198] sm:$0xff] }
 0xdcf   :  { %v4850_v16 = vpop.eup %4849 }
 0xdd0   :  { %3788 = vmatmul.mubr.f32.gmra.mrb[30].mxu0 %v4850_v16  ;;  %v2393_v16 = vld [vmem:[#allocation11 + $0xe8] sm:$0xff] }
 0xdd1   :  { %3857 = vmatprep.mubr.msk.f32.mxu0 %vm5017_vm0, %v5018_v1 }
 0xde2   :  { %v1831_v19 = vpop.f32.mrb[24].mxu1 }
 0xde3   :  { %v1835_v20 = vadd.f32 %v1831_v19, %v1701_v18  ;;  %v3824_v22 = vpop.f32.mrb[25].mxu1  ;;  %v4754_v18 = vpack.c.bf16 %v2393_v16, %v2389_v14  ;;  %v2388_v19 = vld [vmem:[#allocation11 + $0xc0] sm:$0xff]  ;;  %v2419_v14 = vld [vmem:[#allocation11 + $0x1b8] sm:$0xff] }
 0xde4   :  { %v2412_v16 = vld [vmem:[#allocation11 + $0x180] sm:$0xff] }
 0xde5   :  { %4851 = vtanh.f32 %v1835_v20  ;;  %v2392_v20 = vld [vmem:[#allocation11 + $0xe0] sm:$0xff] }
 0xde6   :  { %v4756_v22 = vpack.c.bf16 %v2392_v20, %v2388_v19  ;;  %v4798_v19 = vpack.c.bf16 %v2419_v14, %v2415_v12 }
 0xdef   :  { %v4852_v39 = vpop.eup %4851 }
 0xdf0   :  { %3858 = vmatmul.mubr.f32.vlgmr.msra.gmra.mrb[32].mxu0 %v4852_v39  ;;  %v1838_v31 = vsel %vm1837_vm1, %v4852_v39, 0.0  ;;  %v2397_v39 = vld [vmem:[#allocation11 + $0x108] sm:$0xff] }
 0xdf1   :  { %4624 = vmatpush3.bf16.msra.mxu0 %v5548_v36  ;;  %3927 = vmatprep.mubr.msk.f32.mxu0 %vm5017_vm0, %v5018_v1 }
 0xdf2   :  { %4625 = vmatprep.subr.bf16.mxu0 %v5016_v0 }
 0xdf5   :  { %4627 = vmatpush3.bf16.msra.mxu0 %v5552_v40 }
 0xdf6   :  { %4628 = vmatprep.subr.bf16.mxu0 %v5016_v0 }
 0xdf9   :  { %4630 = vmatpush3.bf16.msra.mxu0 %v5556_v43 }
 0xdfa   :  { %4631 = vmatprep.subr.bf16.mxu0 %v5016_v0 }
 0xdfd   :  { %4633 = vmatpush3.bf16.msra.mxu0 %v5560_v46 }
 0xdfe   :  { %4634 = vmatprep.subr.bf16.mxu0 %v5016_v0 }
 0xe01   :  { %4636 = vmatpush3.bf16.msra.mxu0 %v5564_v49 }
 0xe02   :  { %4637 = vmatprep.subr.bf16.mxu0 %v5016_v0 }
 0xe05   :  { %4639 = vmatpush3.bf16.msra.mxu0 %v5568_v52 }
 0xe06   :  { %4640 = vmatprep.subr.bf16.mxu0 %v5016_v0 }
 0xe09   :  { %4642 = vmatpush3.bf16.msra.mxu0 %v5572_v55 }
 0xe0a   :  { %4643 = vmatprep.subr.bf16.mxu0 %v5016_v0 }
 0xe0d   :  { %4645 = vmatpush3.bf16.msra.mxu0 %v5576_v59 }
 0xe0e   :  { %4670 = vmatprep.subr.bf16.mxu0 %v5016_v0 }
 0xea3   :  { %v5657_v8 = vpop.f32.mrb[30].mxu0 }
 0xea4   :  { %v5659_v23 = vpop.f32.mrb[31].mxu0 }
 0xec3   :  { %v1906_v25 = vpop.f32.mrb[32].mxu0 }
 0xec4   :  { %v1910_v26 = vadd.f32 %v1906_v25, %v1706_v24  ;;  %v3859_v27 = vpop.f32.mrb[33].mxu0  ;;  %v2401_v24 = vld [vmem:[#allocation11 + $0x128] sm:$0xff] }
 0xec5   :  { %v4758_v25 = vpack.c.bf16 %v2401_v24, %v2397_v39  ;;  %v2418_v39 = vld [vmem:[#allocation11 + $0x1b0] sm:$0xff]  ;;  %v2421_v24 = vld [vmem:[#allocation11 + $0x1c8] sm:$0xff] }
 0xec6   :  { %4853 = vtanh.f32 %v1910_v26  ;;  %v1731_v26 = vadd.f32 %v5636_v17, %v5659_v23 }
 0xed0   :  { %v4854_v30 = vpop.eup %4853 }
 0xed1   :  { %3893 = vmatmul.mubr.f32.vlgmr.msra.gmra.mrb[26].mxu1 %v4854_v30  ;;  %v1913_v32 = vsel %vm1912_vm2, %v4854_v30, %v1838_v31 }
 0xed2   :  { %4648 = vmatpush3.bf16.msra.mxu1 %v5548_v36  ;;  %3962 = vmatprep.mubr.msk.f32.mxu1 %vm5017_vm0, %v5018_v1 }
 0xed3   :  { %4649 = vmatprep.subr.bf16.mxu1 %v5016_v0 }
 0xed6   :  { %4651 = vmatpush3.bf16.msra.mxu1 %v5552_v40 }
 0xed7   :  { %4652 = vmatprep.subr.bf16.mxu1 %v5016_v0 }
 0xeda   :  { %4654 = vmatpush3.bf16.msra.mxu1 %v5556_v43 }
 0xedb   :  { %4655 = vmatprep.subr.bf16.mxu1 %v5016_v0 }
 0xede   :  { %4657 = vmatpush3.bf16.msra.mxu1 %v5560_v46 }
 0xedf   :  { %4658 = vmatprep.subr.bf16.mxu1 %v5016_v0 }
 0xee2   :  { %4660 = vmatpush3.bf16.msra.mxu1 %v5564_v49 }
 0xee3   :  { %4661 = vmatprep.subr.bf16.mxu1 %v5016_v0 }
 0xee6   :  { %4663 = vmatpush3.bf16.msra.mxu1 %v5568_v52 }
 0xee7   :  { %4664 = vmatprep.subr.bf16.mxu1 %v5016_v0 }
 0xeea   :  { %4666 = vmatpush3.bf16.msra.mxu1 %v5572_v55 }
 0xeeb   :  { %4667 = vmatprep.subr.bf16.mxu1 %v5016_v0 }
 0xeee   :  { %4669 = vmatpush3.bf16.msra.mxu1 %v5576_v59 }
 0xeef   :  { %4694 = vmatprep.subr.bf16.mxu1 %v5016_v0 }
 0xfa4   :  { %v1981_v33 = vpop.f32.mrb[26].mxu1 }
 0xfa5   :  { %v1985_v9 = vadd.f32 %v1981_v33, %v1711_v10  ;;  %v3894_v15 = vpop.f32.mrb[27].mxu1  ;;  %v2370_v10 = vld [vmem:[#allocation11 + $0x30] sm:$0xff]  ;;  %v2375_v33 = vld [vmem:[#allocation11 + $0x58] sm:$0xff] }
 0xfa7   :  { %4855 = vtanh.f32 %v1985_v9  ;;  %v2379_v9 = vld [vmem:[#allocation11 + $0x78] sm:$0xff] }
 0xfb1   :  { %v4856_v21 = vpop.eup %4855 }
 0xfb2   :  { %3928 = vmatmul.mubr.f32.vlgmr.msra.gmra.mrb[34].mxu0 %v4856_v21  ;;  %v1988_v28 = vsel %vm1987_vm3, %v4856_v21, %v1913_v32  ;;  %v2366_v32 = vld [vmem:[#allocation11 + $0x10] sm:$0xff]  ;;  %v4778_v21 = vpack.c.bf16 %v2379_v9, %v2375_v33  ;;  %v2424_v33 = vld [vmem:[#allocation11 + $0x1e0] sm:$0xff] }
 0xfb3   :  { %4672 = vmatpush3.bf16.msra.mxu0 %v5548_v36  ;;  %3997 = vmatprep.mubr.msk.f32.mxu0 %vm5017_vm0, %v5018_v1  ;;  %v4776_v15 = vpack.c.bf16 %v2370_v10, %v2366_v32  ;;  %v2420_v10 = vld [vmem:[#allocation11 + $0x1c0] sm:$0xff]  ;;  %v2422_v9 = vld [vmem:[#allocation11 + $0x1d0] sm:$0xff] }
 0xfb4   :  { %4673 = vmatprep.subr.bf16.mxu0 %v5016_v0 }
 0xfb7   :  { %4675 = vmatpush3.bf16.msra.mxu0 %v5552_v40 }
 0xfb8   :  { %4676 = vmatprep.subr.bf16.mxu0 %v5016_v0 }
 0xfbb   :  { %4678 = vmatpush3.bf16.msra.mxu0 %v5556_v43 }
 0xfbc   :  { %4679 = vmatprep.subr.bf16.mxu0 %v5016_v0 }
 0xfbf   :  { %4681 = vmatpush3.bf16.msra.mxu0 %v5560_v46 }
 0xfc0   :  { %4682 = vmatprep.subr.bf16.mxu0 %v5016_v0 }
 0xfc3   :  { %4684 = vmatpush3.bf16.msra.mxu0 %v5564_v49 }
 0xfc4   :  { %4685 = vmatprep.subr.bf16.mxu0 %v5016_v0 }
 0xfc7   :  { %4687 = vmatpush3.bf16.msra.mxu0 %v5568_v52 }
 0xfc8   :  { %4688 = vmatprep.subr.bf16.mxu0 %v5016_v0 }
 0xfcb   :  { %4690 = vmatpush3.bf16.msra.mxu0 %v5572_v55 }
 0xfcc   :  { %4691 = vmatprep.subr.bf16.mxu0 %v5016_v0 }
 0xfcf   :  { %4693 = vmatpush3.bf16.msra.mxu0 %v5576_v59 }
 0xfd0   :  { %4718 = vmatprep.subr.bf16.mxu0 %v5016_v0 }
0x1085   :  { %v2056_v35 = vpop.f32.mrb[34].mxu0 }
0x1086   :  { %v2060_v37 = vadd.f32 %v2056_v35, %v1716_v34  ;;  %v3929_v38 = vpop.f32.mrb[35].mxu0  ;;  %v2378_v34 = vld [vmem:[#allocation11 + $0x70] sm:$0xff] }
0x1087   :  { %v2387_v38 = vld [vmem:[#allocation11 + $0xb8] sm:$0xff] }
0x1088   :  { %4857 = vtanh.f32 %v2060_v37  ;;  %v2383_v37 = vld [vmem:[#allocation11 + $0x98] sm:$0xff] }
0x1092   :  { %v4858_v41 = vpop.eup %4857 }
0x1093   :  { %3963 = vmatmul.mubr.f32.vlgmr.msra.gmra.mrb[28].mxu1 %v4858_v41  ;;  %v2063_v42 = vsel %vm2062_vm4, %v4858_v41, %v1988_v28  ;;  %v2374_v28 = vld [vmem:[#allocation11 + $0x50] sm:$0xff] }
0x1094   :  { %4696 = vmatpush3.bf16.msra.mxu1 %v5548_v36  ;;  %4032 = vmatprep.mubr.msk.f32.mxu1 %vm5017_vm0, %v5018_v1  ;;  %v4780_v23 = vpack.c.bf16 %v2378_v34, %v2374_v28  ;;  %v1736_v34 = vadd.f32 %v5657_v8, %v5636_v17 }
0x1095   :  { %4697 = vmatprep.subr.bf16.mxu1 %v5016_v0 }
0x1098   :  { %4699 = vmatpush3.bf16.msra.mxu1 %v5552_v40 }
0x1099   :  { %4700 = vmatprep.subr.bf16.mxu1 %v5016_v0 }
0x109c   :  { %4702 = vmatpush3.bf16.msra.mxu1 %v5556_v43 }
0x109d   :  { %4703 = vmatprep.subr.bf16.mxu1 %v5016_v0 }
0x10a0   :  { %4705 = vmatpush3.bf16.msra.mxu1 %v5560_v46 }
0x10a1   :  { %4706 = vmatprep.subr.bf16.mxu1 %v5016_v0 }
0x10a4   :  { %4708 = vmatpush3.bf16.msra.mxu1 %v5564_v49 }
0x10a5   :  { %4709 = vmatprep.subr.bf16.mxu1 %v5016_v0 }
0x10a8   :  { %4711 = vmatpush3.bf16.msra.mxu1 %v5568_v52 }
0x10a9   :  { %4712 = vmatprep.subr.bf16.mxu1 %v5016_v0 }
0x10ac   :  { %4714 = vmatpush3.bf16.msra.mxu1 %v5572_v55 }
0x10ad   :  { %4715 = vmatprep.subr.bf16.mxu1 %v5016_v0 }
0x10b0   :  { %4717 = vmatpush3.bf16.msra.mxu1 %v5576_v59 }
0x1166   :  { %v2131_v45 = vpop.f32.mrb[28].mxu1 }
0x1167   :  { %v2135_v47 = vadd.f32 %v2131_v45, %v1721_v58  ;;  %v3964_v48 = vpop.f32.mrb[29].mxu1  ;;  %v2382_v58 = vld [vmem:[#allocation11 + $0x90] sm:$0xff] }
0x1168   :  { %v2386_v45 = vld [vmem:[#allocation11 + $0xb0] sm:$0xff]  ;;  %v2395_v48 = vld [vmem:[#allocation11 + $0xf8] sm:$0xff] }
0x1169   :  { %4859 = vtanh.f32 %v2135_v47  ;;  %v2391_v47 = vld [vmem:[#allocation11 + $0xd8] sm:$0xff] }
0x1173   :  { %v4860_v50 = vpop.eup %4859 }
0x1174   :  { %3998 = vmatmul.mubr.f32.vlgmr.msra.gmra.mrb[36].mxu0 %v4860_v50  ;;  %v2138_v51 = vsel %vm2137_vm5, %v4860_v50, %v2063_v42  ;;  %v4782_v42 = vpack.c.bf16 %v2387_v38, %v2383_v37  ;;  %v4784_v50 = vpack.c.bf16 %v2386_v45, %v2382_v58  ;;  %v2430_v58 = vlaneseq }
0x1175   :  { %4720 = vmatpush3.bf16.msra.mxu0 %v5548_v36  ;;  %4067 = vmatprep.mubr.msk.f32.mxu0 %vm5017_vm0, %v5018_v1  ;;  %v1726_v36 = vadd.f32 %v5603_v6, %v5636_v17  ;;  %v2385_v6 = vld [vmem:[#allocation11 + $0xa8] sm:$0xff] }
0x1176   :  { %4721 = vmatprep.subr.bf16.mxu0 %v5016_v0  ;;  %v4750_v7 = vpack.c.bf16 %v2385_v6, %v2381_v3  ;;  %v2410_v3 = vld [vmem:[#allocation11 + $0x170] sm:$0xff]  ;;  %v2431_v45 = vshrl.u32 %v2430_v58, 7 }
0x1178   :  { %v2436_v17 = vsub.s32 1, %v2431_v45  ;;  %v2444_v8 = vsub.s32 3, %v2431_v45 }
0x1179   :  { %4723 = vmatpush3.bf16.msra.mxu0 %v5552_v40 }
0x117a   :  { %4724 = vmatprep.subr.bf16.mxu0 %v5016_v0 }
0x117d   :  { %4726 = vmatpush3.bf16.msra.mxu0 %v5556_v43 }
0x117e   :  { %4727 = vmatprep.subr.bf16.mxu0 %v5016_v0 }
0x1181   :  { %4729 = vmatpush3.bf16.msra.mxu0 %v5560_v46 }
0x1182   :  { %4730 = vmatprep.subr.bf16.mxu0 %v5016_v0 }
0x1185   :  { %4732 = vmatpush3.bf16.msra.mxu0 %v5564_v49 }
0x1186   :  { %4733 = vmatprep.subr.bf16.mxu0 %v5016_v0 }
0x1189   :  { %4735 = vmatpush3.bf16.msra.mxu0 %v5568_v52 }
0x118a   :  { %4736 = vmatprep.subr.bf16.mxu0 %v5016_v0 }
0x118d   :  { %4738 = vmatpush3.bf16.msra.mxu0 %v5572_v55  ;;  %v2367_v55 = vld [vmem:[#allocation11 + $0x18] sm:$0xff] }
0x118e   :  { %4739 = vmatprep.subr.bf16.mxu0 %v5016_v0  ;;  %v4742_v0 = vpack.c.bf16 %v2369_v54, %v2365_v53  ;;  %v4774_v60 = vpack.c.bf16 %v2371_v56, %v2367_v55  ;;  %v2400_v53 = vld [vmem:[#allocation11 + $0x120] sm:$0xff]  ;;  %v2398_v54 = vld [vmem:[#allocation11 + $0x110] sm:$0xff] }
0x1190   :  { %4743 = vmatprep.subr.bf16.mxu1 %v4742_v0  ;;  %v2402_v0 = vld [vmem:[#allocation11 + $0x130] sm:$0xff] }
0x1191   :  { %4741 = vmatpush3.bf16.msra.mxu0 %v5576_v59  ;;  %v2368_v59 = vld [vmem:[#allocation11 + $0x20] sm:$0xff]  ;;  %v4792_v56 = vpack.c.bf16 %v2402_v0, %v2398_v54 }
0x1192   :  { %v4744_v61 = vpack.c.bf16 %v2368_v59, %v2364_v57  ;;  %4775 = vmatprep.subr.bf16.mxu0 %v4774_v60  ;;  %v2405_v57 = vld [vmem:[#allocation11 + $0x148] sm:$0xff]  ;;  %v2407_v60 = vld [vmem:[#allocation11 + $0x158] sm:$0xff] }
0x1193   :  { %v2409_v59 = vld [vmem:[#allocation11 + $0x168] sm:$0xff]  ;;  %v4794_v44 = vpack.c.bf16 %v2411_v63, %v2407_v60 }
0x1247   :  { %v2206_v40 = vpop.f32.mrb[36].mxu0 }
0x1248   :  { %v2210_v43 = vadd.f32 %v2206_v40, %v1726_v36  ;;  %v3999_v46 = vpop.f32.mrb[37].mxu0  ;;  %v2390_v36 = vld [vmem:[#allocation11 + $0xd0] sm:$0xff] }
0x1249   :  { %v2394_v40 = vld [vmem:[#allocation11 + $0xf0] sm:$0xff]  ;;  %v2403_v46 = vld [vmem:[#allocation11 + $0x138] sm:$0xff] }
0x124a   :  { %4861 = vtanh.f32 %v2210_v43  ;;  %v2399_v43 = vld [vmem:[#allocation11 + $0x118] sm:$0xff] }
0x1254   :  { %v4862_v49 = vpop.eup %4861 }
0x1255   :  { %4033 = vmatmul.mubr.f32.vlgmr.msra.gmra.mrb[30].mxu1 %v4862_v49  ;;  %v2213_v52 = vsel %vm2212_vm6, %v4862_v49, %v2138_v51  ;;  %v4786_v51 = vpack.c.bf16 %v2395_v48, %v2391_v47  ;;  %v4788_v49 = vpack.c.bf16 %v2394_v40, %v2390_v36  ;;  %v2432_v47 = vsub.s32 0, %v2431_v45 }
0x1256   :  { %2514 = vmatprep.mubr.f32.mxu1 %v5018_v1  ;;  %4745 = vmatpush1.bf16.msra.mxu1 %v4744_v61  ;;  %v4762_v61 = vpack.c.bf16 %v2409_v59, %v2405_v57  ;;  %v2440_v48 = vsub.s32 2, %v2431_v45 }
0x1257   :  { %4747 = vmatprep.subr.bf16.mxu1 %v4746_v4  ;;  %v2408_v4 = vld [vmem:[#allocation11 + $0x160] sm:$0xff] }
0x1258   :  { %v4764_v5 = vpack.c.bf16 %v2408_v4, %v2404_v2 }
0x125a   :  { %4749 = vmatpush1.bf16.msra.mxu1 %v4748_v62  ;;  %v2406_v62 = vld [vmem:[#allocation11 + $0x150] sm:$0xff] }
0x125b   :  { %4751 = vmatprep.subr.bf16.mxu1 %v4750_v7  ;;  %v4796_v6 = vpack.c.bf16 %v2410_v3, %v2406_v62  ;;  %v2413_v7 = vld [vmem:[#allocation11 + $0x188] sm:$0xff] }
0x125e   :  { %4753 = vmatpush1.bf16.msra.mxu1 %v4752_v13  ;;  %v4766_v13 = vpack.c.bf16 %v2417_v11, %v2413_v7 }
0x125f   :  { %4755 = vmatprep.subr.bf16.mxu1 %v4754_v18  ;;  %v2416_v18 = vld [vmem:[#allocation11 + $0x1a0] sm:$0xff] }
0x1260   :  { %v4768_v20 = vpack.c.bf16 %v2416_v18, %v2412_v16 }
0x1262   :  { %4757 = vmatpush1.bf16.msra.mxu1 %v4756_v22  ;;  %v2414_v22 = vld [vmem:[#allocation11 + $0x190] sm:$0xff] }
0x1263   :  { %4759 = vmatprep.subr.bf16.mxu1 %v4758_v25  ;;  %v4800_v25 = vpack.c.bf16 %v2418_v39, %v2414_v22 }
0x1328   :  { %v2281_v27 = vpop.f32.mrb[30].mxu1 }
0x1329   :  { %v2285_v30 = vadd.f32 %v2281_v27, %v1731_v26  ;;  %v4034_v31 = vpop.f32.mrb[31].mxu1  ;;  %v2425_v26 = vld [vmem:[#allocation11 + $0x1e8] sm:$0xff]  ;;  %v2423_v27 = vld [vmem:[#allocation11 + $0x1d8] sm:$0xff] }
0x132a   :  { %v4770_v31 = vpack.c.bf16 %v2425_v26, %v2421_v24 }
0x132b   :  { %4863 = vtanh.f32 %v2285_v30  ;;  %v2427_v30 = vld [vmem:[#allocation11 + $0x1f8] sm:$0xff] }
0x132c   :  { %v4802_v32 = vpack.c.bf16 %v2427_v30, %v2423_v27 }
0x1335   :  { %v4864_v35 = vpop.eup %4863 }
0x1336   :  { %4068 = vmatmul.mubr.f32.vlgmr.msra.gmra.mrb[38].mxu0 %v4864_v35  ;;  %v5753_v41 = vsel %vm2287_vm7, %v4864_v35, %v2213_v52  ;;  %v4790_v52 = vpack.c.bf16 %v2403_v46, %v2399_v43 }
0x1337   :  { %4777 = vmatpush1.bf16.msra.mxu0 %v4776_v15  ;;  %2585 = vmatprep.mubr.f32.mxu0 %v5018_v1  ;;  %v2396_v1 = vld [vmem:[#allocation11 + $0x100] sm:$0xff]  ;;  %v4772_v15 = vpack.c.bf16 %v2424_v33, %v2420_v10 }
0x1338   :  { %4779 = vmatprep.subr.bf16.mxu0 %v4778_v21  ;;  %v4760_v55 = vpack.c.bf16 %v2400_v53, %v2396_v1  ;;  %v2426_v21 = vld [vmem:[#allocation11 + $0x1f0] sm:$0xff] }
0x1339   :  { %v4804_v28 = vpack.c.bf16 %v2426_v21, %v2422_v9 }
0x133a   :  { %4761 = vmatpush1.bf16.msra.mxu1 %v4760_v55 }
0x133b   :  { %4781 = vmatpush1.bf16.msra.mxu0 %v4780_v23  ;;  %4763 = vmatprep.subr.bf16.mxu1 %v4762_v61 }
0x133c   :  { %4783 = vmatprep.subr.bf16.mxu0 %v4782_v42 }
0x133e   :  { %4765 = vmatpush1.bf16.msra.mxu1 %v4764_v5 }
0x133f   :  { %4785 = vmatpush1.bf16.msra.mxu0 %v4784_v50  ;;  %4767 = vmatprep.subr.bf16.mxu1 %v4766_v13  ;;  %v2428_v50 = vld [vmem:[%s5781_s6] sm:$0xf]  ;;  %s4977_s6 = scalar_lea.vmem %s2603_s23, 512 }
0x1340   :  { %4787 = vmatprep.subr.bf16.mxu0 %v4786_v51  ;;  %v2433_v51 = vrot.slane %v2428_v50, %v2432_v47  ;;  %v2441_v36 = vrot.slane %v2428_v50, %v2440_v48  ;;  %v2437_v40 = vrot.slane %v2428_v50, %v2436_v17  ;;  %v2445_v43 = vrot.slane %v2428_v50, %v2444_v8  ;;  %p4978_p12 = scmp.ne.s32.totalorder %s2603_s23, %s4977_s6  ;;  %p4983_p0 = scmp.lt.s32.totalorder %s4977_s6, %s4977_s6 }
0x1342   :  { %4769 = vmatpush1.bf16.msra.mxu1 %v4768_v20  ;;  %p4984_p1 = por %p4983_p0, %p4982_p13 }
0x1343   :  { %4789 = vmatpush1.bf16.msra.mxu0 %v4788_v49  ;;  %4771 = vmatprep.subr.bf16.mxu1 %v4770_v31 }
0x1344   :  { %4791 = vmatprep.subr.bf16.mxu0 %v4790_v52  ;;  %p4985_p2 = pnand %p4984_p1, %p4978_p12 }
0x1346   :  { %4773 = vmatpush1.bf16.msra.mxu1 %v4772_v15 }
0x1347   :  { %4793 = vmatpush1.bf16.msra.mxu0 %v4792_v56 }
0x1348   :  { %4795 = vmatprep.subr.bf16.mxu0 %v4794_v44 }
0x134b   :  { %4797 = vmatpush1.bf16.msra.mxu0 %v4796_v6 }
0x134c   :  { %4799 = vmatprep.subr.bf16.mxu0 %v4798_v19 }
0x134f   :  { %4801 = vmatpush1.bf16.msra.mxu0 %v4800_v25 }
0x1350   :  { %4803 = vmatprep.subr.bf16.mxu0 %v4802_v32 }
0x1353   :  { %4805 = vmatpush1.bf16.msra.mxu0 %v4804_v28 }
0x1409   :  { %v2356_v35 = vpop.f32.mrb[38].mxu0 }
0x140a   :  { %v2360_v37 = vadd.f32 %v2356_v35, %v1736_v34  ;;  %v4069_v38 = vpop.f32.mrb[39].mxu0 }
0x140c   :  { %4865 = vtanh.f32 %v2360_v37 }
0x1416   :  { %v4866_v23 = vpop.eup %4865 }
0x1417   :  { %v2363_v42 = vsel %vm2362_vm8, %v4866_v23, %v5753_v41 }
0x1418   :  { %2515 = vmatmul.mubr.f32.vlgmr.msra.gmra.mrb[32].mxu1 %v2363_v42  ;;  %2586 = vmatmul.mubr.f32.vlgmr.msra.gmra.mrb[40].mxu0 %v2363_v42 }
0x14eb   :  { %v2516_v29 = vpop.f32.mrb[32].mxu1  ;;  %v2587_v41 = vpop.f32.mrb[40].mxu0 }
0x14ec   :  { %v2517_v46 = vadd.f32 %v2516_v29, %v2433_v51  ;;  %v2588_v49 = vadd.f32 %v2587_v41, %v2441_v36  ;;  %v2518_v52 = vpop.f32.mrb[33].mxu1  ;;  %v2589_v1 = vpop.f32.mrb[41].mxu0 }
0x14ed   :  { %v2519_v53 = vadd.f32 %v2518_v52, %v2437_v40  ;;  %v2590_v54 = vadd.f32 %v2589_v1, %v2445_v43 }
0x14ee   :  { %2592 = vst [vmem:[#allocation12] sm:$0xff] %v2517_v46  ;;  %2594 = vst [vmem:[#allocation12 + $0x10] sm:$0xff] %v2588_v49 }
0x14ef   :  { %2593 = vst [vmem:[#allocation12 + $0x8] sm:$0xff] %v2519_v53  ;;  %2595 = vst [vmem:[#allocation12 + $0x18] sm:$0xff] %v2590_v54 }
0x14f0   :  { %4988 = shalt.err (!%p4985_p2)
}
0x14f1   :  { %s4989_s1 = scalar_lea.hbm %s5782_s7, 512 }
0x14f2   :  { %p4990_p3 = scmp.ne.s32.totalorder %s5782_s7, %s4989_s1  ;;  %p4993_p4 = scmp.lt.u32.totalorder %s4989_s1, %s5782_s7 }
0x14f4   :  { %p4995_p5 = pnand %p4993_p4, %p4990_p3 }
0x14f6   :  { %4998 = shalt.err (!%p4995_p5)
}
0x14f7   :  { %2605 = dma.vmem_to_hbm [thread:$0]  %s2603_s23, 512, %s5782_s7, [#allocation5]  }
0x14f8   :  { %5005 = dma.done.wait [#allocation5], 512  }
0x14f9   :  { %5006 = vsyncadd [#allocation5], 4294966784 }
0x14fa   :  { %2609 = vsyncpa [#allocation4], 1 }
0x14fb   :  { %2610 = vsyncpa [#allocation7], 1 }
0x14fc   :  { %2611 = vsyncpa [#allocation10], 1 }
0x14fd   :  { %2612 = vsyncpa [#allocation5], 1 }

</bundles_post_ra>
